<compile_context>
chip_gen: v7x
topology: tpu7x:2x2x1
jax: 0.10.0
libtpu: 0.0.40
codegen_flags: <defaults>
</compile_context>

<pallas_src>
import functools
import math

import jax
import jax.numpy as jnp
import numpy as np
from jax.experimental import pallas as pl
from jax.experimental.pallas import tpu as pltpu

_LN_EPS = 1e-5
_NEG_INF = -1e30


def _layer_norm(x, g, b):
    mu = jnp.mean(x, axis=-1, keepdims=True)
    var = jnp.mean(jnp.square(x - mu), axis=-1, keepdims=True)
    return (x - mu) * jax.lax.rsqrt(var + _LN_EPS) * g + b


# ---------------------------------------------------------------------------
# Stage 1 (runs ONCE): LayerNorm1(text) + Q projection, emitted head-major and
# pre-transposed as (H, Dh, T_pad) so the per-video kernel can use it directly
# as the RHS of a single (Vb*F, Dh) @ (Dh, T) score matmul (no Vb broadcast,
# no XLA reshape/transpose between the two pallas_calls).
# ---------------------------------------------------------------------------
def _text_q_kernel(text_ref, wqh_ref, bqh_ref, g1_ref, b1_ref, qT_ref, *,
                   num_heads, mm_dtype):
    t = _layer_norm(text_ref[...].astype(jnp.float32), g1_ref[...], b1_ref[...])
    tT = t.astype(mm_dtype).T                         # (E, T_pad): one small transpose
    for h in range(num_heads):                        # static unroll; H is small
        qT_ref[h] = (jnp.dot(wqh_ref[h], tT, preferred_element_type=jnp.float32)
                     + bqh_ref[h]).astype(qT_ref.dtype)


# ---------------------------------------------------------------------------
# Stage 2: per video-block cross attention + out_proj + LN2 + linear + LN3.
# ---------------------------------------------------------------------------
def _xpool_video_kernel(
        qT_ref, vid_ref, wkv_ref, bkv_ref, woh_ref, bo_ref, wl_ref, bl_ref,
        g1_ref, b1_ref, g2_ref, b2_ref, g3_ref, b3_ref,
        out_ref, kv_sc, acc_sc, *, num_heads, head_dim, valid_frames, mm_dtype):
    H, Dh = num_heads, head_dim
    E = H * Dh
    Vb, F, _ = vid_ref.shape
    T = qT_ref.shape[2]
    inv_sqrt_d = 1.0 / math.sqrt(Dh)

    # LayerNorm1 on the video block (f32 math), flattened to (Vb*F, E).
    vid = _layer_norm(vid_ref[...].astype(jnp.float32), g1_ref[...], b1_ref[...])
    vid2d = vid.reshape(Vb * F, E).astype(mm_dtype)

    # Fused K/V projection: ONE lane-dense (Vb*F, E) @ (E, 2E) matmul, parked in
    # a VMEM scratch so the head loop does not carry it in vregs.
    kv_sc[...] = (jnp.dot(vid2d, wkv_ref[...], preferred_element_type=jnp.float32)
                  + bkv_ref[...]).astype(kv_sc.dtype)

    # Frame-padding logit bias (static): only materialized when frames were padded.
    if valid_frames < F:
        fids = jax.lax.broadcasted_iota(jnp.int32, (1, F, 1), 1)
        fbias = jnp.where(fids < valid_frames, 0.0, _NEG_INF).astype(jnp.float32)
    else:
        fbias = None

    # Per-head attention.  Scores are one big non-batched matmul with M = Vb*F rows,
    # softmax runs over the frame (sublane) axis, and each head's output is folded
    # straight into the out-projection by accumulation (identical to concat + Wo).
    # TODO(synk): lane-aligned concat + single K=E out-projection when Dh % 128 == 0.
    for h in range(H):                                # static unroll; H is small
        k_h = kv_sc[:, h * Dh:(h + 1) * Dh]           # (Vb*F, Dh)
        v_h = kv_sc[:, E + h * Dh:E + (h + 1) * Dh].reshape(Vb, F, Dh)

        s = jnp.dot(k_h, qT_ref[h], preferred_element_type=jnp.float32)  # (Vb*F, T)
        s = s.reshape(Vb, F, T) * inv_sqrt_d
        if fbias is not None:
            s = s + fbias
        s = s - jnp.max(s, axis=1, keepdims=True)
        p = jnp.exp(s)
        p = p / jnp.sum(p, axis=1, keepdims=True)      # exact divide (numerics parity)

        pT = jnp.swapaxes(p, 1, 2).astype(mm_dtype)    # (Vb, T, F)
        o_h = jnp.einsum('vtf,vfd->vtd', pT, v_h,
                         preferred_element_type=jnp.float32)             # (Vb, T, Dh)
        contrib = jnp.dot(o_h.reshape(Vb * T, Dh).astype(mm_dtype), woh_ref[h],
                          preferred_element_type=jnp.float32)            # (Vb*T, E)
        if h == 0:
            acc_sc[...] = contrib
        else:
            acc_sc[...] += contrib

    attn = acc_sc[...] + bo_ref[...]
    attn = _layer_norm(attn, g2_ref[...], b2_ref[...])
    lin = jnp.dot(attn.astype(mm_dtype), wl_ref[...],
                  preferred_element_type=jnp.float32) + bl_ref[...]
    # TODO(synk): training-mode dropout not implemented (eval-mode identity).
    out = _layer_norm(attn + lin, g3_ref[...], b3_ref[...])
    out_ref[...] = out.reshape(Vb, T, E).astype(out_ref.dtype)


# ---------------------------------------------------------------------------
# Wrapper
# ---------------------------------------------------------------------------
def xpool_transformer(text_embeds, video_embeds, params, *, num_heads,
                      videos_per_block=None, matmul_dtype=None):
    T, E = text_embeds.shape
    V, F, Ev = video_embeds.shape
    assert Ev == E
    H = num_heads
    assert E % H == 0
    Dh = E // H
    f32 = jnp.float32
    mm_dtype = jnp.dtype(matmul_dtype) if matmul_dtype is not None else jnp.dtype(f32)
    mm_bytes = mm_dtype.itemsize
    out_dtype = text_embeds.dtype

    # TODO(synk): pad E to a multiple of 128 (mask-aware LayerNorm) when E is not
    #             128-aligned; the demo below uses E=128 so all stores are lane-dense.

    # ---- row padding to sublane multiples (bf16 packs 2 rows/sublane -> 16) ----
    row_mult = 16 if mm_bytes == 2 else 8
    T_pad = -(-T // row_mult) * row_mult
    F_pad = -(-F // row_mult) * row_mult
    text_p = text_embeds.astype(f32)
    if T_pad != T:
        text_p = jnp.pad(text_p, ((0, T_pad - T), (0, 0)))
    # Stream the (large) video tensor at matmul precision: halves HBM traffic on the
    # bf16 path (v5e is memory bound here); LayerNorm math stays f32 in-kernel.
    video_p = video_embeds.astype(mm_dtype)
    if F_pad != F:
        video_p = jnp.pad(video_p, ((0, 0), (0, F_pad - F), (0, 0)))

    # ---- one-time weight prep: pre-transposed / per-head split / fused K+V ----
    wq_hT = params['wq'].reshape(H, Dh, E).astype(mm_dtype)       # (H, Dh, E)
    bq_h = params['bq'].reshape(H, Dh, 1).astype(f32)
    w_kv = jnp.concatenate([params['wk'].T, params['wv'].T], axis=1).astype(mm_dtype)  # (E, 2E)
    b_kv = jnp.concatenate([params['bk'], params['bv']]).reshape(1, 2 * E).astype(f32)
    wo_h = params['wo'].T.reshape(H, Dh, E).astype(mm_dtype)      # (H, Dh, E)
    bo = params['bo'].reshape(1, E).astype(f32)
    wl_t = params['wl'].T.astype(mm_dtype)                        # (E, E)
    bl = params['bl'].reshape(1, E).astype(f32)
    g1 = params['g1'].reshape(1, E).astype(f32); b1 = params['b1'].reshape(1, E).astype(f32)
    g2 = params['g2'].reshape(1, E).astype(f32); b2 = params['b2'].reshape(1, E).astype(f32)
    g3 = params['g3'].reshape(1, E).astype(f32); b3 = params['b3'].reshape(1, E).astype(f32)

    # ---- stage 1: text path, computed exactly once ----
    qT = pl.pallas_call(
        functools.partial(_text_q_kernel, num_heads=H, mm_dtype=mm_dtype),
        out_shape=jax.ShapeDtypeStruct((H, Dh, T_pad), mm_dtype),
    )(text_p, wq_hT, bq_h, g1, b1)

    # ---- videos per grid step ----
    if videos_per_block is None:
        # Target ~256 MXU rows per K/V projection (v6e/v7x MXU is 256 wide; fine on
        # v5e as well).  TODO(synk): branch on pltpu.get_tpu_info() per generation.
        videos_per_block = max(1, 256 // F_pad)
        if V >= 2:
            videos_per_block = min(videos_per_block, (V + 1) // 2)   # keep >= 2 blocks
    Vb = max(1, min(videos_per_block, V))

    # VMEM budget (v7x has only 64 MiB per TensorCore): shrink Vb until we fit.
    const_bytes = ((w_kv.size + wo_h.size + wl_t.size + qT.size) * mm_bytes
                   + (b_kv.size + bo.size + bl.size + 6 * E) * 4)
    out_bytes = jnp.dtype(out_dtype).itemsize

    def vmem_est(vb):
        return (2 * vb * F_pad * E * mm_bytes        # video block (double buffered)
                + 2 * vb * T_pad * E * out_bytes     # output block (double buffered)
                + vb * F_pad * 2 * E * mm_bytes      # fused K/V scratch
                + vb * T_pad * E * 4                 # f32 out-projection accumulator
                + const_bytes)

    while Vb > 1 and vmem_est(Vb) > 40 * 1024 * 1024:
        Vb -= 1

    nblk = -(-V // Vb)
    if nblk > 1 and nblk % 2 == 1:
        nblk += 1                                    # v7x: even block count across 2 TCs
    V_pad = nblk * Vb
    if V_pad != V:
        video_p = jnp.pad(video_p, ((0, V_pad - V), (0, 0), (0, 0)))

    # ---- block specs: constants single-buffered, video/output blocks pipelined ----
    def _const_spec(arr):
        n = arr.ndim
        return pl.BlockSpec(arr.shape, lambda i: (0,) * n,
                            pipeline_mode=pl.Buffered(1))

    in_specs = [
        _const_spec(qT),
        pl.BlockSpec((Vb, F_pad, E), lambda i: (i, 0, 0)),
        _const_spec(w_kv), _const_spec(b_kv),
        _const_spec(wo_h), _const_spec(bo),
        _const_spec(wl_t), _const_spec(bl),
        _const_spec(g1), _const_spec(b1), _const_spec(g2), _const_spec(b2),
        _const_spec(g3), _const_spec(b3),
    ]

    kernel = functools.partial(_xpool_video_kernel, num_heads=H, head_dim=Dh,
                               valid_frames=F, mm_dtype=mm_dtype)
    vmem_limit = int(min(100 * 1024 * 1024, max(8 * 1024 * 1024, 2 * vmem_est(Vb))))

    out = pl.pallas_call(
        kernel,
        out_shape=jax.ShapeDtypeStruct((V_pad, T_pad, E), out_dtype),
        grid=(nblk,),
        in_specs=in_specs,
        out_specs=pl.BlockSpec((Vb, T_pad, E), lambda i: (i, 0, 0)),
        scratch_shapes=[
            pltpu.VMEM((Vb * F_pad, 2 * E), mm_dtype),   # fused K/V results
            pltpu.VMEM((Vb * T_pad, E), jnp.float32),    # out-projection accumulator
        ],
        compiler_params=pltpu.CompilerParams(
            dimension_semantics=("parallel",),
            vmem_limit_bytes=vmem_limit,
        ),
    )(qT, video_p, w_kv, b_kv, wo_h, bo, wl_t, bl, g1, b1, g2, b2, g3, b3)

    return out[:V, :T, :]


# ---------------------------------------------------------------------------
# Pure-JAX reference (mirrors the PyTorch module exactly) for verification
# ---------------------------------------------------------------------------
def _reference(text_embeds, video_embeds, params, *, num_heads):
    E = text_embeds.shape[-1]
    H = num_heads
    Dh = E // H

    def ln(x, g, b):
        mu = x.mean(-1, keepdims=True)
        var = ((x - mu) ** 2).mean(-1, keepdims=True)
        return (x - mu) / jnp.sqrt(var + _LN_EPS) * g + b

    t = ln(text_embeds, params['g1'], params['b1'])
    vd = ln(video_embeds, params['g1'], params['b1'])

    q = t @ params['wq'].T + params['bq']
    k = vd @ params['wk'].T + params['bk']
    v = vd @ params['wv'].T + params['bv']

    T = t.shape[0]
    V, F, _ = vd.shape
    q = q.reshape(T, H, Dh).transpose(1, 2, 0)              # (H, Dh, T)
    k = k.reshape(V, F, H, Dh).transpose(0, 2, 1, 3)        # (V, H, F, Dh)
    v = v.reshape(V, F, H, Dh).transpose(0, 2, 3, 1)        # (V, H, Dh, F)

    logits = jnp.einsum('vhfd,hdt->vhft', k, q) / math.sqrt(Dh)
    w = jax.nn.softmax(logits, axis=2)
    attn = jnp.einsum('vhdf,vhft->vhdt', v, w)
    attn = attn.transpose(0, 3, 1, 2).reshape(V, T, E)
    attn = attn @ params['wo'].T + params['bo']

    attn = ln(attn, params['g2'], params['b2'])
    lin = attn @ params['wl'].T + params['bl']
    out = ln(attn + lin, params['g3'], params['b3'])
    return out


# ---------------------------------------------------------------------------
# Parameters: near-identity projections (the module inits to eye/zero) plus a
# small random perturbation so the matmul paths are actually exercised.
# ---------------------------------------------------------------------------
def make_params(key, embed_dim, dtype=jnp.float32):
    ks = jax.random.split(key, 16)
    eye = jnp.eye(embed_dim, dtype=dtype)

    def w(k):
        return eye + 0.1 * jax.random.normal(k, (embed_dim, embed_dim), dtype)

    def b(k):
        return 0.1 * jax.random.normal(k, (embed_dim,), dtype)

    def g(k):
        return 1.0 + 0.05 * jax.random.normal(k, (embed_dim,), dtype)

    return {
        'wq': w(ks[0]), 'bq': b(ks[1]),
        'wk': w(ks[2]), 'bk': b(ks[3]),
        'wv': w(ks[4]), 'bv': b(ks[5]),
        'wo': w(ks[6]), 'bo': b(ks[7]),
        'wl': w(ks[8]), 'bl': b(ks[9]),
        'g1': g(ks[10]), 'b1': b(ks[11]),
        'g2': g(ks[12]), 'b2': b(ks[13]),
        'g3': g(ks[14]), 'b3': b(ks[15]),
    }


if __name__ == "__main__":
    # Ragged small shapes exercise the padding/masking paths; E=128 keeps the
    # output lane-dense (see TODO for non-128-aligned E).
    num_texts, num_vids, num_frames = 10, 3, 6
    embed_dim, num_heads = 128, 4

    key = jax.random.PRNGKey(0)
    k1, k2, k3 = jax.random.split(key, 3)
    text_embeds = jax.random.normal(k1, (num_texts, embed_dim), dtype=jnp.float32)
    video_embeds = jax.random.normal(k2, (num_vids, num_frames, embed_dim),
                                     dtype=jnp.float32)
    params = make_params(k3, embed_dim)

    ref = _reference(text_embeds, video_embeds, params, num_heads=num_heads)

    # f32 matmul path (exact softmax divide -> tight tolerance now holds).
    run_f32 = jax.jit(functools.partial(xpool_transformer, num_heads=num_heads))
    out_f32 = jax.block_until_ready(run_f32(text_embeds, video_embeds, params))
    np.testing.assert_allclose(np.asarray(out_f32), np.asarray(ref),
                               rtol=5e-3, atol=5e-3)

    # bf16 matmul operands with f32 accumulation (LN/softmax stay f32 in-kernel).
    run_bf16 = jax.jit(functools.partial(xpool_transformer, num_heads=num_heads,
                                         matmul_dtype=jnp.bfloat16))
    out_bf16 = jax.block_until_ready(run_bf16(text_embeds, video_embeds, params))
    np.testing.assert_allclose(np.asarray(out_bf16), np.asarray(ref),
                               rtol=2e-1, atol=2e-1)

    print("KERNEL_OK")
</pallas_src>

<mosaic_0001>
module attributes {stable_mosaic.version = 11 : i64} {
  func.func @_text_q_kernel(%arg0: memref<16x128xf32, #tpu.memory_space<vmem>>, %arg1: memref<4x32x128xf32, #tpu.memory_space<vmem>>, %arg2: memref<4x32x1xf32, #tpu.memory_space<vmem>>, %arg3: memref<1x128xf32, #tpu.memory_space<vmem>>, %arg4: memref<1x128xf32, #tpu.memory_space<vmem>>, %arg5: memref<4x32x16xf32, #tpu.memory_space<vmem>>) attributes {dimension_semantics = [], scalar_prefetch = 0 : i64, scratch_operands = 0 : i64, tpu.core_type = #tpu.core_type<tc>} {
    %c0 = arith.constant 0 : index
    %c0_0 = arith.constant 0 : index
    %0 = vector.load %arg0[%c0, %c0_0] : memref<16x128xf32, #tpu.memory_space<vmem>>, vector<16x128xf32>
    %c0_1 = arith.constant 0 : index
    %c0_2 = arith.constant 0 : index
    %1 = vector.load %arg3[%c0_1, %c0_2] : memref<1x128xf32, #tpu.memory_space<vmem>>, vector<1x128xf32>
    %c0_3 = arith.constant 0 : index
    %c0_4 = arith.constant 0 : index
    %2 = vector.load %arg4[%c0_3, %c0_4] : memref<1x128xf32, #tpu.memory_space<vmem>>, vector<1x128xf32>
    %cst = arith.constant dense<0.000000e+00> : vector<16xf32>
    %3 = vector.multi_reduction <add>, %0, %cst [1] : vector<16x128xf32> to vector<16xf32>
    %4 = vector.shape_cast %3 : vector<16xf32> to vector<16x1xf32>
    %cst_5 = arith.constant 1.280000e+02 : f32
    %5 = vector.broadcast %cst_5 : f32 to vector<16x1xf32>
    %6 = arith.divf %4, %5 : vector<16x1xf32>
    %7 = vector.broadcast %6 : vector<16x1xf32> to vector<16x128xf32>
    %8 = arith.subf %0, %7 : vector<16x128xf32>
    %9 = arith.mulf %8, %8 : vector<16x128xf32>
    %cst_6 = arith.constant dense<0.000000e+00> : vector<16xf32>
    %10 = vector.multi_reduction <add>, %9, %cst_6 [1] : vector<16x128xf32> to vector<16xf32>
    %11 = vector.shape_cast %10 : vector<16xf32> to vector<16x1xf32>
    %cst_7 = arith.constant 1.280000e+02 : f32
    %12 = vector.broadcast %cst_7 : f32 to vector<16x1xf32>
    %13 = arith.divf %11, %12 : vector<16x1xf32>
    %14 = vector.broadcast %6 : vector<16x1xf32> to vector<16x128xf32>
    %15 = arith.subf %0, %14 : vector<16x128xf32>
    %cst_8 = arith.constant 9.99999974E-6 : f32
    %16 = vector.broadcast %cst_8 : f32 to vector<16x1xf32>
    %17 = arith.addf %13, %16 : vector<16x1xf32>
    %18 = math.rsqrt %17 : vector<16x1xf32>
    %19 = vector.broadcast %18 : vector<16x1xf32> to vector<16x128xf32>
    %20 = arith.mulf %15, %19 : vector<16x128xf32>
    %21 = vector.broadcast %1 : vector<1x128xf32> to vector<16x128xf32>
    %22 = arith.mulf %20, %21 : vector<16x128xf32>
    %23 = vector.broadcast %2 : vector<1x128xf32> to vector<16x128xf32>
    %24 = arith.addf %22, %23 : vector<16x128xf32>
    %25 = tpu.transpose %24, [1, 0] : vector<16x128xf32> -> vector<128x16xf32>
    %c0_9 = arith.constant 0 : index
    %c0_10 = arith.constant 0 : index
    %c0_11 = arith.constant 0 : index
    %26 = vector.load %arg1[%c0_9, %c0_10, %c0_11] : memref<4x32x128xf32, #tpu.memory_space<vmem>>, vector<1x32x128xf32>
    %27 = vector.shape_cast %26 : vector<1x32x128xf32> to vector<32x128xf32>
    %cst_12 = arith.constant dense<0.000000e+00> : vector<32x16xf32>
    %28 = tpu.matmul %27, %25, %cst_12 {dimension_numbers = #tpu.dot_dimension_numbers<[1], [0], [0], [1], [0, 0, 1, 1], [], []>} : vector<32x128xf32>, vector<128x16xf32>, vector<32x16xf32> -> vector<32x16xf32>
    %c0_13 = arith.constant 0 : index
    %c0_14 = arith.constant 0 : index
    %c0_15 = arith.constant 0 : index
    %29 = vector.load %arg2[%c0_13, %c0_14, %c0_15] : memref<4x32x1xf32, #tpu.memory_space<vmem>>, vector<1x32x1xf32>
    %30 = vector.shape_cast %29 : vector<1x32x1xf32> to vector<32x1xf32>
    %31 = vector.broadcast %30 : vector<32x1xf32> to vector<32x16xf32>
    %32 = arith.addf %28, %31 : vector<32x16xf32>
    %c0_16 = arith.constant 0 : index
    %c0_17 = arith.constant 0 : index
    %c0_18 = arith.constant 0 : index
    %33 = vector.load %arg5[%c0_16, %c0_17, %c0_18] : memref<4x32x16xf32, #tpu.memory_space<vmem>>, vector<1x32x16xf32>
    %34 = vector.shape_cast %33 : vector<1x32x16xf32> to vector<32x16xf32>
    %35 = vector.shape_cast %32 : vector<32x16xf32> to vector<1x32x16xf32>
    tpu.vector_store %arg5[%c0_16, %c0_17, %c0_18], %35 {strides = array<i32>} : memref<4x32x16xf32, #tpu.memory_space<vmem>>, vector<1x32x16xf32>,
    %c1 = arith.constant 1 : index
    %c0_19 = arith.constant 0 : index
    %c0_20 = arith.constant 0 : index
    %36 = vector.load %arg1[%c1, %c0_19, %c0_20] : memref<4x32x128xf32, #tpu.memory_space<vmem>>, vector<1x32x128xf32>
    %37 = vector.shape_cast %36 : vector<1x32x128xf32> to vector<32x128xf32>
    %cst_21 = arith.constant dense<0.000000e+00> : vector<32x16xf32>
    %38 = tpu.matmul %37, %25, %cst_21 {dimension_numbers = #tpu.dot_dimension_numbers<[1], [0], [0], [1], [0, 0, 1, 1], [], []>} : vector<32x128xf32>, vector<128x16xf32>, vector<32x16xf32> -> vector<32x16xf32>
    %c1_22 = arith.constant 1 : index
    %c0_23 = arith.constant 0 : index
    %c0_24 = arith.constant 0 : index
    %39 = vector.load %arg2[%c1_22, %c0_23, %c0_24] : memref<4x32x1xf32, #tpu.memory_space<vmem>>, vector<1x32x1xf32>
    %40 = vector.shape_cast %39 : vector<1x32x1xf32> to vector<32x1xf32>
    %41 = vector.broadcast %40 : vector<32x1xf32> to vector<32x16xf32>
    %42 = arith.addf %38, %41 : vector<32x16xf32>
    %c1_25 = arith.constant 1 : index
    %c0_26 = arith.constant 0 : index
    %c0_27 = arith.constant 0 : index
    %43 = vector.load %arg5[%c1_25, %c0_26, %c0_27] : memref<4x32x16xf32, #tpu.memory_space<vmem>>, vector<1x32x16xf32>
    %44 = vector.shape_cast %43 : vector<1x32x16xf32> to vector<32x16xf32>
    %45 = vector.shape_cast %42 : vector<32x16xf32> to vector<1x32x16xf32>
    tpu.vector_store %arg5[%c1_25, %c0_26, %c0_27], %45 {strides = array<i32>} : memref<4x32x16xf32, #tpu.memory_space<vmem>>, vector<1x32x16xf32>,
    %c2 = arith.constant 2 : index
    %c0_28 = arith.constant 0 : index
    %c0_29 = arith.constant 0 : index
    %46 = vector.load %arg1[%c2, %c0_28, %c0_29] : memref<4x32x128xf32, #tpu.memory_space<vmem>>, vector<1x32x128xf32>
    %47 = vector.shape_cast %46 : vector<1x32x128xf32> to vector<32x128xf32>
    %cst_30 = arith.constant dense<0.000000e+00> : vector<32x16xf32>
    %48 = tpu.matmul %47, %25, %cst_30 {dimension_numbers = #tpu.dot_dimension_numbers<[1], [0], [0], [1], [0, 0, 1, 1], [], []>} : vector<32x128xf32>, vector<128x16xf32>, vector<32x16xf32> -> vector<32x16xf32>
    %c2_31 = arith.constant 2 : index
    %c0_32 = arith.constant 0 : index
    %c0_33 = arith.constant 0 : index
    %49 = vector.load %arg2[%c2_31, %c0_32, %c0_33] : memref<4x32x1xf32, #tpu.memory_space<vmem>>, vector<1x32x1xf32>
    %50 = vector.shape_cast %49 : vector<1x32x1xf32> to vector<32x1xf32>
    %51 = vector.broadcast %50 : vector<32x1xf32> to vector<32x16xf32>
    %52 = arith.addf %48, %51 : vector<32x16xf32>
    %c2_34 = arith.constant 2 : index
    %c0_35 = arith.constant 0 : index
    %c0_36 = arith.constant 0 : index
    %53 = vector.load %arg5[%c2_34, %c0_35, %c0_36] : memref<4x32x16xf32, #tpu.memory_space<vmem>>, vector<1x32x16xf32>
    %54 = vector.shape_cast %53 : vector<1x32x16xf32> to vector<32x16xf32>
    %55 = vector.shape_cast %52 : vector<32x16xf32> to vector<1x32x16xf32>
    tpu.vector_store %arg5[%c2_34, %c0_35, %c0_36], %55 {strides = array<i32>} : memref<4x32x16xf32, #tpu.memory_space<vmem>>, vector<1x32x16xf32>,
    %c3 = arith.constant 3 : index
    %c0_37 = arith.constant 0 : index
    %c0_38 = arith.constant 0 : index
    %56 = vector.load %arg1[%c3, %c0_37, %c0_38] : memref<4x32x128xf32, #tpu.memory_space<vmem>>, vector<1x32x128xf32>
    %57 = vector.shape_cast %56 : vector<1x32x128xf32> to vector<32x128xf32>
    %cst_39 = arith.constant dense<0.000000e+00> : vector<32x16xf32>
    %58 = tpu.matmul %57, %25, %cst_39 {dimension_numbers = #tpu.dot_dimension_numbers<[1], [0], [0], [1], [0, 0, 1, 1], [], []>} : vector<32x128xf32>, vector<128x16xf32>, vector<32x16xf32> -> vector<32x16xf32>
    %c3_40 = arith.constant 3 : index
    %c0_41 = arith.constant 0 : index
    %c0_42 = arith.constant 0 : index
    %59 = vector.load %arg2[%c3_40, %c0_41, %c0_42] : memref<4x32x1xf32, #tpu.memory_space<vmem>>, vector<1x32x1xf32>
    %60 = vector.shape_cast %59 : vector<1x32x1xf32> to vector<32x1xf32>
    %61 = vector.broadcast %60 : vector<32x1xf32> to vector<32x16xf32>
    %62 = arith.addf %58, %61 : vector<32x16xf32>
    %c3_43 = arith.constant 3 : index
    %c0_44 = arith.constant 0 : index
    %c0_45 = arith.constant 0 : index
    %63 = vector.load %arg5[%c3_43, %c0_44, %c0_45] : memref<4x32x16xf32, #tpu.memory_space<vmem>>, vector<1x32x16xf32>
    %64 = vector.shape_cast %63 : vector<1x32x16xf32> to vector<32x16xf32>
    %65 = vector.shape_cast %62 : vector<32x16xf32> to vector<1x32x16xf32>
    tpu.vector_store %arg5[%c3_43, %c0_44, %c0_45], %65 {strides = array<i32>} : memref<4x32x16xf32, #tpu.memory_space<vmem>>, vector<1x32x16xf32>,
    return
  }
}

module attributes {stable_mosaic.version = 11 : i64} {
  func.func @_xpool_video_kernel(%arg0: i32, %arg1: memref<4x32x16xf32, #tpu.memory_space<vmem>>, %arg2: memref<2x8x128xf32, #tpu.memory_space<vmem>>, %arg3: memref<128x256xf32, #tpu.memory_space<vmem>>, %arg4: memref<1x256xf32, #tpu.memory_space<vmem>>, %arg5: memref<4x32x128xf32, #tpu.memory_space<vmem>>, %arg6: memref<1x128xf32, #tpu.memory_space<vmem>>, %arg7: memref<128x128xf32, #tpu.memory_space<vmem>>, %arg8: memref<1x128xf32, #tpu.memory_space<vmem>>, %arg9: memref<1x128xf32, #tpu.memory_space<vmem>>, %arg10: memref<1x128xf32, #tpu.memory_space<vmem>>, %arg11: memref<1x128xf32, #tpu.memory_space<vmem>>, %arg12: memref<1x128xf32, #tpu.memory_space<vmem>>, %arg13: memref<1x128xf32, #tpu.memory_space<vmem>>, %arg14: memref<1x128xf32, #tpu.memory_space<vmem>>, %arg15: memref<2x16x128xf32, #tpu.memory_space<vmem>>, %arg16: memref<16x256xf32, #tpu.memory_space<vmem>>, %arg17: memref<32x128xf32, #tpu.memory_space<vmem>>) attributes {dimension_semantics = [#tpu.dimension_semantics<parallel>], iteration_bounds = array<i64: 2>, scalar_prefetch = 0 : i64, scratch_operands = 2 : i64, tpu.core_type = #tpu.core_type<tc>, window_params = [{pipeline_mode = #tpu.pipeline_mode<synchronous>, transform_indices = @transform_0, window_bounds = array<i64: 4, 32, 16>}, {transform_indices = @transform_1, window_bounds = array<i64: 2, 8, 128>}, {pipeline_mode = #tpu.pipeline_mode<synchronous>, transform_indices = @transform_2, window_bounds = array<i64: 128, 256>}, {pipeline_mode = #tpu.pipeline_mode<synchronous>, transform_indices = @transform_3, window_bounds = array<i64: 1, 256>}, {pipeline_mode = #tpu.pipeline_mode<synchronous>, transform_indices = @transform_4, window_bounds = array<i64: 4, 32, 128>}, {pipeline_mode = #tpu.pipeline_mode<synchronous>, transform_indices = @transform_5, window_bounds = array<i64: 1, 128>}, {pipeline_mode = #tpu.pipeline_mode<synchronous>, transform_indices = @transform_6, window_bounds = array<i64: 128, 128>}, {pipeline_mode = #tpu.pipeline_mode<synchronous>, transform_indices = @transform_7, window_bounds = array<i64: 1, 128>}, {pipeline_mode = #tpu.pipeline_mode<synchronous>, transform_indices = @transform_8, window_bounds = array<i64: 1, 128>}, {pipeline_mode = #tpu.pipeline_mode<synchronous>, transform_indices = @transform_9, window_bounds = array<i64: 1, 128>}, {pipeline_mode = #tpu.pipeline_mode<synchronous>, transform_indices = @transform_10, window_bounds = array<i64: 1, 128>}, {pipeline_mode = #tpu.pipeline_mode<synchronous>, transform_indices = @transform_11, window_bounds = array<i64: 1, 128>}, {pipeline_mode = #tpu.pipeline_mode<synchronous>, transform_indices = @transform_12, window_bounds = array<i64: 1, 128>}, {pipeline_mode = #tpu.pipeline_mode<synchronous>, transform_indices = @transform_13, window_bounds = array<i64: 1, 128>}, {transform_indices = @transform_14, window_bounds = array<i64: 2, 16, 128>}]} {
    %c0 = arith.constant 0 : index
    %c0_0 = arith.constant 0 : index
    %c0_1 = arith.constant 0 : index
    %0 = vector.load %arg2[%c0, %c0_0, %c0_1] : memref<2x8x128xf32, #tpu.memory_space<vmem>>, vector<2x8x128xf32>
    %c0_2 = arith.constant 0 : index
    %c0_3 = arith.constant 0 : index
    %1 = vector.load %arg9[%c0_2, %c0_3] : memref<1x128xf32, #tpu.memory_space<vmem>>, vector<1x128xf32>
    %c0_4 = arith.constant 0 : index
    %c0_5 = arith.constant 0 : index
    %2 = vector.load %arg10[%c0_4, %c0_5] : memref<1x128xf32, #tpu.memory_space<vmem>>, vector<1x128xf32>
    %cst = arith.constant dense<0.000000e+00> : vector<2x8xf32>
    %3 = vector.multi_reduction <add>, %0, %cst [2] : vector<2x8x128xf32> to vector<2x8xf32>
    %4 = vector.shape_cast %3 : vector<2x8xf32> to vector<2x8x1xf32>
    %cst_6 = arith.constant 1.280000e+02 : f32
    %5 = vector.broadcast %cst_6 : f32 to vector<2x8x1xf32>
    %6 = arith.divf %4, %5 : vector<2x8x1xf32>
    %7 = vector.broadcast %6 : vector<2x8x1xf32> to vector<2x8x128xf32>
    %8 = arith.subf %0, %7 : vector<2x8x128xf32>
    %9 = arith.mulf %8, %8 : vector<2x8x128xf32>
    %cst_7 = arith.constant dense<0.000000e+00> : vector<2x8xf32>
    %10 = vector.multi_reduction <add>, %9, %cst_7 [2] : vector<2x8x128xf32> to vector<2x8xf32>
    %11 = vector.shape_cast %10 : vector<2x8xf32> to vector<2x8x1xf32>
    %cst_8 = arith.constant 1.280000e+02 : f32
    %12 = vector.broadcast %cst_8 : f32 to vector<2x8x1xf32>
    %13 = arith.divf %11, %12 : vector<2x8x1xf32>
    %14 = vector.broadcast %6 : vector<2x8x1xf32> to vector<2x8x128xf32>
    %15 = arith.subf %0, %14 : vector<2x8x128xf32>
    %cst_9 = arith.constant 9.99999974E-6 : f32
    %16 = vector.broadcast %cst_9 : f32 to vector<2x8x1xf32>
    %17 = arith.addf %13, %16 : vector<2x8x1xf32>
    %18 = math.rsqrt %17 : vector<2x8x1xf32>
    %19 = vector.broadcast %18 : vector<2x8x1xf32> to vector<2x8x128xf32>
    %20 = arith.mulf %15, %19 : vector<2x8x128xf32>
    %21 = vector.shape_cast %1 : vector<1x128xf32> to vector<1x1x128xf32>
    %22 = vector.broadcast %21 : vector<1x1x128xf32> to vector<2x8x128xf32>
    %23 = arith.mulf %20, %22 : vector<2x8x128xf32>
    %24 = vector.shape_cast %2 : vector<1x128xf32> to vector<1x1x128xf32>
    %25 = vector.broadcast %24 : vector<1x1x128xf32> to vector<2x8x128xf32>
    %26 = arith.addf %23, %25 : vector<2x8x128xf32>
    %27 = vector.shape_cast %26 : vector<2x8x128xf32> to vector<16x128xf32>
    %c0_10 = arith.constant 0 : index
    %c0_11 = arith.constant 0 : index
    %28 = vector.load %arg3[%c0_10, %c0_11] : memref<128x256xf32, #tpu.memory_space<vmem>>, vector<128x256xf32>
    %cst_12 = arith.constant dense<0.000000e+00> : vector<16x256xf32>
    %29 = tpu.matmul %27, %28, %cst_12 {dimension_numbers = #tpu.dot_dimension_numbers<[1], [0], [0], [1], [0, 0, 1, 1], [], []>} : vector<16x128xf32>, vector<128x256xf32>, vector<16x256xf32> -> vector<16x256xf32>
    %c0_13 = arith.constant 0 : index
    %c0_14 = arith.constant 0 : index
    %30 = vector.load %arg4[%c0_13, %c0_14] : memref<1x256xf32, #tpu.memory_space<vmem>>, vector<1x256xf32>
    %31 = vector.broadcast %30 : vector<1x256xf32> to vector<16x256xf32>
    %32 = arith.addf %29, %31 : vector<16x256xf32>
    %c0_15 = arith.constant 0 : index
    %c0_16 = arith.constant 0 : index
    %33 = vector.load %arg16[%c0_15, %c0_16] : memref<16x256xf32, #tpu.memory_space<vmem>>, vector<16x256xf32>
    tpu.vector_store %arg16[%c0_15, %c0_16], %32 {strides = array<i32>} : memref<16x256xf32, #tpu.memory_space<vmem>>, vector<16x256xf32>,
    %34 = tpu.iota {dimensions = array<i32: 1>} : vector<1x8x1xi32>
    %c6_i32 = arith.constant 6 : i32
    %35 = vector.broadcast %c6_i32 : i32 to vector<1x8x1xi32>
    %36 = arith.cmpi slt, %34, %35 : vector<1x8x1xi32>
    %cst_17 = arith.constant 0.000000e+00 : f32
    %cst_18 = arith.constant -1.000000e+30 : f32
    %37 = vector.broadcast %cst_17 : f32 to vector<1x8x1xf32>
    %38 = vector.broadcast %cst_18 : f32 to vector<1x8x1xf32>
    %39 = arith.select %36, %37, %38 : vector<1x8x1xi1>, vector<1x8x1xf32>
    %c0_19 = arith.constant 0 : index
    %c0_20 = arith.constant 0 : index
    %40 = vector.load %arg16[%c0_19, %c0_20] : memref<16x256xf32, #tpu.memory_space<vmem>>, vector<16x32xf32>
    %c0_21 = arith.constant 0 : index
    %c128 = arith.constant 128 : index
    %41 = vector.load %arg16[%c0_21, %c128] : memref<16x256xf32, #tpu.memory_space<vmem>>, vector<16x32xf32>
    %42 = vector.shape_cast %41 : vector<16x32xf32> to vector<2x8x32xf32>
    %c0_22 = arith.constant 0 : index
    %c0_23 = arith.constant 0 : index
    %c0_24 = arith.constant 0 : index
    %43 = vector.load %arg1[%c0_22, %c0_23, %c0_24] : memref<4x32x16xf32, #tpu.memory_space<vmem>>, vector<1x32x16xf32>
    %44 = vector.shape_cast %43 : vector<1x32x16xf32> to vector<32x16xf32>
    %cst_25 = arith.constant dense<0.000000e+00> : vector<16x16xf32>
    %45 = tpu.matmul %40, %44, %cst_25 {dimension_numbers = #tpu.dot_dimension_numbers<[1], [0], [0], [1], [0, 0, 1, 1], [], []>} : vector<16x32xf32>, vector<32x16xf32>, vector<16x16xf32> -> vector<16x16xf32>
    %46 = vector.shape_cast %45 : vector<16x16xf32> to vector<2x8x16xf32>
    %cst_26 = arith.constant 0.176776692 : f32
    %47 = vector.broadcast %cst_26 : f32 to vector<2x8x16xf32>
    %48 = arith.mulf %46, %47 : vector<2x8x16xf32>
    %49 = vector.broadcast %39 : vector<1x8x1xf32> to vector<2x8x16xf32>
    %50 = arith.addf %48, %49 : vector<2x8x16xf32>
    %cst_27 = arith.constant dense<0xFF800000> : vector<2x16xf32>
    %51 = vector.multi_reduction <maximumf>, %50, %cst_27 [1] : vector<2x8x16xf32> to vector<2x16xf32>
    %52 = vector.shape_cast %51 : vector<2x16xf32> to vector<2x1x16xf32>
    %53 = vector.broadcast %52 : vector<2x1x16xf32> to vector<2x8x16xf32>
    %54 = arith.subf %50, %53 : vector<2x8x16xf32>
    %55 = math.exp %54 : vector<2x8x16xf32>
    %cst_28 = arith.constant dense<0.000000e+00> : vector<2x16xf32>
    %56 = vector.multi_reduction <add>, %55, %cst_28 [1] : vector<2x8x16xf32> to vector<2x16xf32>
    %57 = vector.shape_cast %56 : vector<2x16xf32> to vector<2x1x16xf32>
    %58 = vector.broadcast %57 : vector<2x1x16xf32> to vector<2x8x16xf32>
    %59 = arith.divf %55, %58 : vector<2x8x16xf32>
    %60 = tpu.transpose %59, [0, 2, 1] : vector<2x8x16xf32> -> vector<2x16x8xf32>
    "tpu.trace_start"() <{level = 10 : i32, message = "vtf,vfd->vtd"}> : () -> ()
    %cst_29 = arith.constant dense<0.000000e+00> : vector<2x16x32xf32>
    %61 = tpu.matmul %60, %42, %cst_29 {dimension_numbers = #tpu.dot_dimension_numbers<[2], [1], [1], [2], [0, 0, 0, 1, 1, 2], [0], [0]>} : vector<2x16x8xf32>, vector<2x8x32xf32>, vector<2x16x32xf32> -> vector<2x16x32xf32>
    "tpu.trace_stop"() : () -> ()
    %62 = vector.shape_cast %61 : vector<2x16x32xf32> to vector<32x32xf32>
    %c0_30 = arith.constant 0 : index
    %c0_31 = arith.constant 0 : index
    %c0_32 = arith.constant 0 : index
    %63 = vector.load %arg5[%c0_30, %c0_31, %c0_32] : memref<4x32x128xf32, #tpu.memory_space<vmem>>, vector<1x32x128xf32>
    %64 = vector.shape_cast %63 : vector<1x32x128xf32> to vector<32x128xf32>
    %cst_33 = arith.constant dense<0.000000e+00> : vector<32x128xf32>
    %65 = tpu.matmul %62, %64, %cst_33 {dimension_numbers = #tpu.dot_dimension_numbers<[1], [0], [0], [1], [0, 0, 1, 1], [], []>} : vector<32x32xf32>, vector<32x128xf32>, vector<32x128xf32> -> vector<32x128xf32>
    %c0_34 = arith.constant 0 : index
    %c0_35 = arith.constant 0 : index
    %66 = vector.load %arg17[%c0_34, %c0_35] : memref<32x128xf32, #tpu.memory_space<vmem>>, vector<32x128xf32>
    tpu.vector_store %arg17[%c0_34, %c0_35], %65 {strides = array<i32>} : memref<32x128xf32, #tpu.memory_space<vmem>>, vector<32x128xf32>,
    %c0_36 = arith.constant 0 : index
    %c32 = arith.constant 32 : index
    %67 = vector.load %arg16[%c0_36, %c32] : memref<16x256xf32, #tpu.memory_space<vmem>>, vector<16x32xf32>
    %c0_37 = arith.constant 0 : index
    %c160 = arith.constant 160 : index
    %68 = vector.load %arg16[%c0_37, %c160] : memref<16x256xf32, #tpu.memory_space<vmem>>, vector<16x32xf32>
    %69 = vector.shape_cast %68 : vector<16x32xf32> to vector<2x8x32xf32>
    %c1 = arith.constant 1 : index
    %c0_38 = arith.constant 0 : index
    %c0_39 = arith.constant 0 : index
    %70 = vector.load %arg1[%c1, %c0_38, %c0_39] : memref<4x32x16xf32, #tpu.memory_space<vmem>>, vector<1x32x16xf32>
    %71 = vector.shape_cast %70 : vector<1x32x16xf32> to vector<32x16xf32>
    %cst_40 = arith.constant dense<0.000000e+00> : vector<16x16xf32>
    %72 = tpu.matmul %67, %71, %cst_40 {dimension_numbers = #tpu.dot_dimension_numbers<[1], [0], [0], [1], [0, 0, 1, 1], [], []>} : vector<16x32xf32>, vector<32x16xf32>, vector<16x16xf32> -> vector<16x16xf32>
    %73 = vector.shape_cast %72 : vector<16x16xf32> to vector<2x8x16xf32>
    %cst_41 = arith.constant 0.176776692 : f32
    %74 = vector.broadcast %cst_41 : f32 to vector<2x8x16xf32>
    %75 = arith.mulf %73, %74 : vector<2x8x16xf32>
    %76 = vector.broadcast %39 : vector<1x8x1xf32> to vector<2x8x16xf32>
    %77 = arith.addf %75, %76 : vector<2x8x16xf32>
    %cst_42 = arith.constant dense<0xFF800000> : vector<2x16xf32>
    %78 = vector.multi_reduction <maximumf>, %77, %cst_42 [1] : vector<2x8x16xf32> to vector<2x16xf32>
    %79 = vector.shape_cast %78 : vector<2x16xf32> to vector<2x1x16xf32>
    %80 = vector.broadcast %79 : vector<2x1x16xf32> to vector<2x8x16xf32>
    %81 = arith.subf %77, %80 : vector<2x8x16xf32>
    %82 = math.exp %81 : vector<2x8x16xf32>
    %cst_43 = arith.constant dense<0.000000e+00> : vector<2x16xf32>
    %83 = vector.multi_reduction <add>, %82, %cst_43 [1] : vector<2x8x16xf32> to vector<2x16xf32>
    %84 = vector.shape_cast %83 : vector<2x16xf32> to vector<2x1x16xf32>
    %85 = vector.broadcast %84 : vector<2x1x16xf32> to vector<2x8x16xf32>
    %86 = arith.divf %82, %85 : vector<2x8x16xf32>
    %87 = tpu.transpose %86, [0, 2, 1] : vector<2x8x16xf32> -> vector<2x16x8xf32>
    "tpu.trace_start"() <{level = 10 : i32, message = "vtf,vfd->vtd"}> : () -> ()
    %cst_44 = arith.constant dense<0.000000e+00> : vector<2x16x32xf32>
    %88 = tpu.matmul %87, %69, %cst_44 {dimension_numbers = #tpu.dot_dimension_numbers<[2], [1], [1], [2], [0, 0, 0, 1, 1, 2], [0], [0]>} : vector<2x16x8xf32>, vector<2x8x32xf32>, vector<2x16x32xf32> -> vector<2x16x32xf32>
    "tpu.trace_stop"() : () -> ()
    %89 = vector.shape_cast %88 : vector<2x16x32xf32> to vector<32x32xf32>
    %c1_45 = arith.constant 1 : index
    %c0_46 = arith.constant 0 : index
    %c0_47 = arith.constant 0 : index
    %90 = vector.load %arg5[%c1_45, %c0_46, %c0_47] : memref<4x32x128xf32, #tpu.memory_space<vmem>>, vector<1x32x128xf32>
    %91 = vector.shape_cast %90 : vector<1x32x128xf32> to vector<32x128xf32>
    %cst_48 = arith.constant dense<0.000000e+00> : vector<32x128xf32>
    %92 = tpu.matmul %89, %91, %cst_48 {dimension_numbers = #tpu.dot_dimension_numbers<[1], [0], [0], [1], [0, 0, 1, 1], [], []>} : vector<32x32xf32>, vector<32x128xf32>, vector<32x128xf32> -> vector<32x128xf32>
    %c0_49 = arith.constant 0 : index
    %c0_50 = arith.constant 0 : index
    %93 = vector.load %arg17[%c0_49, %c0_50] : memref<32x128xf32, #tpu.memory_space<vmem>>, vector<32x128xf32>
    %94 = arith.addf %93, %92 : vector<32x128xf32>
    %c0_51 = arith.constant 0 : index
    %c0_52 = arith.constant 0 : index
    %95 = vector.load %arg17[%c0_51, %c0_52] : memref<32x128xf32, #tpu.memory_space<vmem>>, vector<32x128xf32>
    tpu.vector_store %arg17[%c0_51, %c0_52], %94 {strides = array<i32>} : memref<32x128xf32, #tpu.memory_space<vmem>>, vector<32x128xf32>,
    %c0_53 = arith.constant 0 : index
    %c64 = arith.constant 64 : index
    %96 = vector.load %arg16[%c0_53, %c64] : memref<16x256xf32, #tpu.memory_space<vmem>>, vector<16x32xf32>
    %c0_54 = arith.constant 0 : index
    %c192 = arith.constant 192 : index
    %97 = vector.load %arg16[%c0_54, %c192] : memref<16x256xf32, #tpu.memory_space<vmem>>, vector<16x32xf32>
    %98 = vector.shape_cast %97 : vector<16x32xf32> to vector<2x8x32xf32>
    %c2 = arith.constant 2 : index
    %c0_55 = arith.constant 0 : index
    %c0_56 = arith.constant 0 : index
    %99 = vector.load %arg1[%c2, %c0_55, %c0_56] : memref<4x32x16xf32, #tpu.memory_space<vmem>>, vector<1x32x16xf32>
    %100 = vector.shape_cast %99 : vector<1x32x16xf32> to vector<32x16xf32>
    %cst_57 = arith.constant dense<0.000000e+00> : vector<16x16xf32>
    %101 = tpu.matmul %96, %100, %cst_57 {dimension_numbers = #tpu.dot_dimension_numbers<[1], [0], [0], [1], [0, 0, 1, 1], [], []>} : vector<16x32xf32>, vector<32x16xf32>, vector<16x16xf32> -> vector<16x16xf32>
    %102 = vector.shape_cast %101 : vector<16x16xf32> to vector<2x8x16xf32>
    %cst_58 = arith.constant 0.176776692 : f32
    %103 = vector.broadcast %cst_58 : f32 to vector<2x8x16xf32>
    %104 = arith.mulf %102, %103 : vector<2x8x16xf32>
    %105 = vector.broadcast %39 : vector<1x8x1xf32> to vector<2x8x16xf32>
    %106 = arith.addf %104, %105 : vector<2x8x16xf32>
    %cst_59 = arith.constant dense<0xFF800000> : vector<2x16xf32>
    %107 = vector.multi_reduction <maximumf>, %106, %cst_59 [1] : vector<2x8x16xf32> to vector<2x16xf32>
    %108 = vector.shape_cast %107 : vector<2x16xf32> to vector<2x1x16xf32>
    %109 = vector.broadcast %108 : vector<2x1x16xf32> to vector<2x8x16xf32>
    %110 = arith.subf %106, %109 : vector<2x8x16xf32>
    %111 = math.exp %110 : vector<2x8x16xf32>
    %cst_60 = arith.constant dense<0.000000e+00> : vector<2x16xf32>
    %112 = vector.multi_reduction <add>, %111, %cst_60 [1] : vector<2x8x16xf32> to vector<2x16xf32>
    %113 = vector.shape_cast %112 : vector<2x16xf32> to vector<2x1x16xf32>
    %114 = vector.broadcast %113 : vector<2x1x16xf32> to vector<2x8x16xf32>
    %115 = arith.divf %111, %114 : vector<2x8x16xf32>
    %116 = tpu.transpose %115, [0, 2, 1] : vector<2x8x16xf32> -> vector<2x16x8xf32>
    "tpu.trace_start"() <{level = 10 : i32, message = "vtf,vfd->vtd"}> : () -> ()
    %cst_61 = arith.constant dense<0.000000e+00> : vector<2x16x32xf32>
    %117 = tpu.matmul %116, %98, %cst_61 {dimension_numbers = #tpu.dot_dimension_numbers<[2], [1], [1], [2], [0, 0, 0, 1, 1, 2], [0], [0]>} : vector<2x16x8xf32>, vector<2x8x32xf32>, vector<2x16x32xf32> -> vector<2x16x32xf32>
    "tpu.trace_stop"() : () -> ()
    %118 = vector.shape_cast %117 : vector<2x16x32xf32> to vector<32x32xf32>
    %c2_62 = arith.constant 2 : index
    %c0_63 = arith.constant 0 : index
    %c0_64 = arith.constant 0 : index
    %119 = vector.load %arg5[%c2_62, %c0_63, %c0_64] : memref<4x32x128xf32, #tpu.memory_space<vmem>>, vector<1x32x128xf32>
    %120 = vector.shape_cast %119 : vector<1x32x128xf32> to vector<32x128xf32>
    %cst_65 = arith.constant dense<0.000000e+00> : vector<32x128xf32>
    %121 = tpu.matmul %118, %120, %cst_65 {dimension_numbers = #tpu.dot_dimension_numbers<[1], [0], [0], [1], [0, 0, 1, 1], [], []>} : vector<32x32xf32>, vector<32x128xf32>, vector<32x128xf32> -> vector<32x128xf32>
    %c0_66 = arith.constant 0 : index
    %c0_67 = arith.constant 0 : index
    %122 = vector.load %arg17[%c0_66, %c0_67] : memref<32x128xf32, #tpu.memory_space<vmem>>, vector<32x128xf32>
    %123 = arith.addf %122, %121 : vector<32x128xf32>
    %c0_68 = arith.constant 0 : index
    %c0_69 = arith.constant 0 : index
    %124 = vector.load %arg17[%c0_68, %c0_69] : memref<32x128xf32, #tpu.memory_space<vmem>>, vector<32x128xf32>
    tpu.vector_store %arg17[%c0_68, %c0_69], %123 {strides = array<i32>} : memref<32x128xf32, #tpu.memory_space<vmem>>, vector<32x128xf32>,
    %c0_70 = arith.constant 0 : index
    %c96 = arith.constant 96 : index
    %125 = vector.load %arg16[%c0_70, %c96] : memref<16x256xf32, #tpu.memory_space<vmem>>, vector<16x32xf32>
    %c0_71 = arith.constant 0 : index
    %c224 = arith.constant 224 : index
    %126 = vector.load %arg16[%c0_71, %c224] : memref<16x256xf32, #tpu.memory_space<vmem>>, vector<16x32xf32>
    %127 = vector.shape_cast %126 : vector<16x32xf32> to vector<2x8x32xf32>
    %c3 = arith.constant 3 : index
    %c0_72 = arith.constant 0 : index
    %c0_73 = arith.constant 0 : index
    %128 = vector.load %arg1[%c3, %c0_72, %c0_73] : memref<4x32x16xf32, #tpu.memory_space<vmem>>, vector<1x32x16xf32>
    %129 = vector.shape_cast %128 : vector<1x32x16xf32> to vector<32x16xf32>
    %cst_74 = arith.constant dense<0.000000e+00> : vector<16x16xf32>
    %130 = tpu.matmul %125, %129, %cst_74 {dimension_numbers = #tpu.dot_dimension_numbers<[1], [0], [0], [1], [0, 0, 1, 1], [], []>} : vector<16x32xf32>, vector<32x16xf32>, vector<16x16xf32> -> vector<16x16xf32>
    %131 = vector.shape_cast %130 : vector<16x16xf32> to vector<2x8x16xf32>
    %cst_75 = arith.constant 0.176776692 : f32
    %132 = vector.broadcast %cst_75 : f32 to vector<2x8x16xf32>
    %133 = arith.mulf %131, %132 : vector<2x8x16xf32>
    %134 = vector.broadcast %39 : vector<1x8x1xf32> to vector<2x8x16xf32>
    %135 = arith.addf %133, %134 : vector<2x8x16xf32>
    %cst_76 = arith.constant dense<0xFF800000> : vector<2x16xf32>
    %136 = vector.multi_reduction <maximumf>, %135, %cst_76 [1] : vector<2x8x16xf32> to vector<2x16xf32>
    %137 = vector.shape_cast %136 : vector<2x16xf32> to vector<2x1x16xf32>
    %138 = vector.broadcast %137 : vector<2x1x16xf32> to vector<2x8x16xf32>
    %139 = arith.subf %135, %138 : vector<2x8x16xf32>
    %140 = math.exp %139 : vector<2x8x16xf32>
    %cst_77 = arith.constant dense<0.000000e+00> : vector<2x16xf32>
    %141 = vector.multi_reduction <add>, %140, %cst_77 [1] : vector<2x8x16xf32> to vector<2x16xf32>
    %142 = vector.shape_cast %141 : vector<2x16xf32> to vector<2x1x16xf32>
    %143 = vector.broadcast %142 : vector<2x1x16xf32> to vector<2x8x16xf32>
    %144 = arith.divf %140, %143 : vector<2x8x16xf32>
    %145 = tpu.transpose %144, [0, 2, 1] : vector<2x8x16xf32> -> vector<2x16x8xf32>
    "tpu.trace_start"() <{level = 10 : i32, message = "vtf,vfd->vtd"}> : () -> ()
    %cst_78 = arith.constant dense<0.000000e+00> : vector<2x16x32xf32>
    %146 = tpu.matmul %145, %127, %cst_78 {dimension_numbers = #tpu.dot_dimension_numbers<[2], [1], [1], [2], [0, 0, 0, 1, 1, 2], [0], [0]>} : vector<2x16x8xf32>, vector<2x8x32xf32>, vector<2x16x32xf32> -> vector<2x16x32xf32>
    "tpu.trace_stop"() : () -> ()
    %147 = vector.shape_cast %146 : vector<2x16x32xf32> to vector<32x32xf32>
    %c3_79 = arith.constant 3 : index
    %c0_80 = arith.constant 0 : index
    %c0_81 = arith.constant 0 : index
    %148 = vector.load %arg5[%c3_79, %c0_80, %c0_81] : memref<4x32x128xf32, #tpu.memory_space<vmem>>, vector<1x32x128xf32>
    %149 = vector.shape_cast %148 : vector<1x32x128xf32> to vector<32x128xf32>
    %cst_82 = arith.constant dense<0.000000e+00> : vector<32x128xf32>
    %150 = tpu.matmul %147, %149, %cst_82 {dimension_numbers = #tpu.dot_dimension_numbers<[1], [0], [0], [1], [0, 0, 1, 1], [], []>} : vector<32x32xf32>, vector<32x128xf32>, vector<32x128xf32> -> vector<32x128xf32>
    %c0_83 = arith.constant 0 : index
    %c0_84 = arith.constant 0 : index
    %151 = vector.load %arg17[%c0_83, %c0_84] : memref<32x128xf32, #tpu.memory_space<vmem>>, vector<32x128xf32>
    %152 = arith.addf %151, %150 : vector<32x128xf32>
    %c0_85 = arith.constant 0 : index
    %c0_86 = arith.constant 0 : index
    %153 = vector.load %arg17[%c0_85, %c0_86] : memref<32x128xf32, #tpu.memory_space<vmem>>, vector<32x128xf32>
    tpu.vector_store %arg17[%c0_85, %c0_86], %152 {strides = array<i32>} : memref<32x128xf32, #tpu.memory_space<vmem>>, vector<32x128xf32>,
    %c0_87 = arith.constant 0 : index
    %c0_88 = arith.constant 0 : index
    %154 = vector.load %arg17[%c0_87, %c0_88] : memref<32x128xf32, #tpu.memory_space<vmem>>, vector<32x128xf32>
    %c0_89 = arith.constant 0 : index
    %c0_90 = arith.constant 0 : index
    %155 = vector.load %arg6[%c0_89, %c0_90] : memref<1x128xf32, #tpu.memory_space<vmem>>, vector<1x128xf32>
    %156 = vector.broadcast %155 : vector<1x128xf32> to vector<32x128xf32>
    %157 = arith.addf %154, %156 : vector<32x128xf32>
    %c0_91 = arith.constant 0 : index
    %c0_92 = arith.constant 0 : index
    %158 = vector.load %arg11[%c0_91, %c0_92] : memref<1x128xf32, #tpu.memory_space<vmem>>, vector<1x128xf32>
    %c0_93 = arith.constant 0 : index
    %c0_94 = arith.constant 0 : index
    %159 = vector.load %arg12[%c0_93, %c0_94] : memref<1x128xf32, #tpu.memory_space<vmem>>, vector<1x128xf32>
    %cst_95 = arith.constant dense<0.000000e+00> : vector<32xf32>
    %160 = vector.multi_reduction <add>, %157, %cst_95 [1] : vector<32x128xf32> to vector<32xf32>
    %161 = vector.shape_cast %160 : vector<32xf32> to vector<32x1xf32>
    %cst_96 = arith.constant 1.280000e+02 : f32
    %162 = vector.broadcast %cst_96 : f32 to vector<32x1xf32>
    %163 = arith.divf %161, %162 : vector<32x1xf32>
    %164 = vector.broadcast %163 : vector<32x1xf32> to vector<32x128xf32>
    %165 = arith.subf %157, %164 : vector<32x128xf32>
    %166 = arith.mulf %165, %165 : vector<32x128xf32>
    %cst_97 = arith.constant dense<0.000000e+00> : vector<32xf32>
    %167 = vector.multi_reduction <add>, %166, %cst_97 [1] : vector<32x128xf32> to vector<32xf32>
    %168 = vector.shape_cast %167 : vector<32xf32> to vector<32x1xf32>
    %cst_98 = arith.constant 1.280000e+02 : f32
    %169 = vector.broadcast %cst_98 : f32 to vector<32x1xf32>
    %170 = arith.divf %168, %169 : vector<32x1xf32>
    %171 = vector.broadcast %163 : vector<32x1xf32> to vector<32x128xf32>
    %172 = arith.subf %157, %171 : vector<32x128xf32>
    %cst_99 = arith.constant 9.99999974E-6 : f32
    %173 = vector.broadcast %cst_99 : f32 to vector<32x1xf32>
    %174 = arith.addf %170, %173 : vector<32x1xf32>
    %175 = math.rsqrt %174 : vector<32x1xf32>
    %176 = vector.broadcast %175 : vector<32x1xf32> to vector<32x128xf32>
    %177 = arith.mulf %172, %176 : vector<32x128xf32>
    %178 = vector.broadcast %158 : vector<1x128xf32> to vector<32x128xf32>
    %179 = arith.mulf %177, %178 : vector<32x128xf32>
    %180 = vector.broadcast %159 : vector<1x128xf32> to vector<32x128xf32>
    %181 = arith.addf %179, %180 : vector<32x128xf32>
    %c0_100 = arith.constant 0 : index
    %c0_101 = arith.constant 0 : index
    %182 = vector.load %arg7[%c0_100, %c0_101] : memref<128x128xf32, #tpu.memory_space<vmem>>, vector<128x128xf32>
    %cst_102 = arith.constant dense<0.000000e+00> : vector<32x128xf32>
    %183 = tpu.matmul %181, %182, %cst_102 {dimension_numbers = #tpu.dot_dimension_numbers<[1], [0], [0], [1], [0, 0, 1, 1], [], []>} : vector<32x128xf32>, vector<128x128xf32>, vector<32x128xf32> -> vector<32x128xf32>
    %c0_103 = arith.constant 0 : index
    %c0_104 = arith.constant 0 : index
    %184 = vector.load %arg8[%c0_103, %c0_104] : memref<1x128xf32, #tpu.memory_space<vmem>>, vector<1x128xf32>
    %185 = vector.broadcast %184 : vector<1x128xf32> to vector<32x128xf32>
    %186 = arith.addf %183, %185 : vector<32x128xf32>
    %187 = arith.addf %181, %186 : vector<32x128xf32>
    %c0_105 = arith.constant 0 : index
    %c0_106 = arith.constant 0 : index
    %188 = vector.load %arg13[%c0_105, %c0_106] : memref<1x128xf32, #tpu.memory_space<vmem>>, vector<1x128xf32>
    %c0_107 = arith.constant 0 : index
    %c0_108 = arith.constant 0 : index
    %189 = vector.load %arg14[%c0_107, %c0_108] : memref<1x128xf32, #tpu.memory_space<vmem>>, vector<1x128xf32>
    %cst_109 = arith.constant dense<0.000000e+00> : vector<32xf32>
    %190 = vector.multi_reduction <add>, %187, %cst_109 [1] : vector<32x128xf32> to vector<32xf32>
    %191 = vector.shape_cast %190 : vector<32xf32> to vector<32x1xf32>
    %cst_110 = arith.constant 1.280000e+02 : f32
    %192 = vector.broadcast %cst_110 : f32 to vector<32x1xf32>
    %193 = arith.divf %191, %192 : vector<32x1xf32>
    %194 = vector.broadcast %193 : vector<32x1xf32> to vector<32x128xf32>
    %195 = arith.subf %187, %194 : vector<32x128xf32>
    %196 = arith.mulf %195, %195 : vector<32x128xf32>
    %cst_111 = arith.constant dense<0.000000e+00> : vector<32xf32>
    %197 = vector.multi_reduction <add>, %196, %cst_111 [1] : vector<32x128xf32> to vector<32xf32>
    %198 = vector.shape_cast %197 : vector<32xf32> to vector<32x1xf32>
    %cst_112 = arith.constant 1.280000e+02 : f32
    %199 = vector.broadcast %cst_112 : f32 to vector<32x1xf32>
    %200 = arith.divf %198, %199 : vector<32x1xf32>
    %201 = vector.broadcast %193 : vector<32x1xf32> to vector<32x128xf32>
    %202 = arith.subf %187, %201 : vector<32x128xf32>
    %cst_113 = arith.constant 9.99999974E-6 : f32
    %203 = vector.broadcast %cst_113 : f32 to vector<32x1xf32>
    %204 = arith.addf %200, %203 : vector<32x1xf32>
    %205 = math.rsqrt %204 : vector<32x1xf32>
    %206 = vector.broadcast %205 : vector<32x1xf32> to vector<32x128xf32>
    %207 = arith.mulf %202, %206 : vector<32x128xf32>
    %208 = vector.broadcast %188 : vector<1x128xf32> to vector<32x128xf32>
    %209 = arith.mulf %207, %208 : vector<32x128xf32>
    %210 = vector.broadcast %189 : vector<1x128xf32> to vector<32x128xf32>
    %211 = arith.addf %209, %210 : vector<32x128xf32>
    %212 = vector.shape_cast %211 : vector<32x128xf32> to vector<2x16x128xf32>
    %c0_114 = arith.constant 0 : index
    %c0_115 = arith.constant 0 : index
    %c0_116 = arith.constant 0 : index
    %213 = vector.load %arg15[%c0_114, %c0_115, %c0_116] : memref<2x16x128xf32, #tpu.memory_space<vmem>>, vector<2x16x128xf32>
    tpu.vector_store %arg15[%c0_114, %c0_115, %c0_116], %212 {strides = array<i32>} : memref<2x16x128xf32, #tpu.memory_space<vmem>>, vector<2x16x128xf32>,
    return
  }
  func.func @transform_0(%arg0: i32) -> (i32, i32, i32) {
    %c0_i32 = arith.constant 0 : i32
    %c0_i32_0 = arith.constant 0 : i32
    %c0_i32_1 = arith.constant 0 : i32
    %c0_i32_2 = arith.constant 0 : i32
    return %c0_i32, %c0_i32_0, %c0_i32_1 : i32, i32, i32
  }
  func.func @transform_1(%arg0: i32) -> (i32, i32, i32) {
    %c0_i32 = arith.constant 0 : i32
    %c0_i32_0 = arith.constant 0 : i32
    %c0_i32_1 = arith.constant 0 : i32
    return %arg0, %c0_i32, %c0_i32_0 : i32, i32, i32
  }
  func.func @transform_2(%arg0: i32) -> (i32, i32) {
    %c0_i32 = arith.constant 0 : i32
    %c0_i32_0 = arith.constant 0 : i32
    %c0_i32_1 = arith.constant 0 : i32
    return %c0_i32, %c0_i32_0 : i32, i32
  }
  func.func @transform_3(%arg0: i32) -> (i32, i32) {
    %c0_i32 = arith.constant 0 : i32
    %c0_i32_0 = arith.constant 0 : i32
    %c0_i32_1 = arith.constant 0 : i32
    return %c0_i32, %c0_i32_0 : i32, i32
  }
  func.func @transform_4(%arg0: i32) -> (i32, i32, i32) {
    %c0_i32 = arith.constant 0 : i32
    %c0_i32_0 = arith.constant 0 : i32
    %c0_i32_1 = arith.constant 0 : i32
    %c0_i32_2 = arith.constant 0 : i32
    return %c0_i32, %c0_i32_0, %c0_i32_1 : i32, i32, i32
  }
  func.func @transform_5(%arg0: i32) -> (i32, i32) {
    %c0_i32 = arith.constant 0 : i32
    %c0_i32_0 = arith.constant 0 : i32
    %c0_i32_1 = arith.constant 0 : i32
    return %c0_i32, %c0_i32_0 : i32, i32
  }
  func.func @transform_6(%arg0: i32) -> (i32, i32) {
    %c0_i32 = arith.constant 0 : i32
    %c0_i32_0 = arith.constant 0 : i32
    %c0_i32_1 = arith.constant 0 : i32
    return %c0_i32, %c0_i32_0 : i32, i32
  }
  func.func @transform_7(%arg0: i32) -> (i32, i32) {
    %c0_i32 = arith.constant 0 : i32
    %c0_i32_0 = arith.constant 0 : i32
    %c0_i32_1 = arith.constant 0 : i32
    return %c0_i32, %c0_i32_0 : i32, i32
  }
  func.func @transform_8(%arg0: i32) -> (i32, i32) {
    %c0_i32 = arith.constant 0 : i32
    %c0_i32_0 = arith.constant 0 : i32
    %c0_i32_1 = arith.constant 0 : i32
    return %c0_i32, %c0_i32_0 : i32, i32
  }
  func.func @transform_9(%arg0: i32) -> (i32, i32) {
    %c0_i32 = arith.constant 0 : i32
    %c0_i32_0 = arith.constant 0 : i32
    %c0_i32_1 = arith.constant 0 : i32
    return %c0_i32, %c0_i32_0 : i32, i32
  }
  func.func @transform_10(%arg0: i32) -> (i32, i32) {
    %c0_i32 = arith.constant 0 : i32
    %c0_i32_0 = arith.constant 0 : i32
    %c0_i32_1 = arith.constant 0 : i32
    return %c0_i32, %c0_i32_0 : i32, i32
  }
  func.func @transform_11(%arg0: i32) -> (i32, i32) {
    %c0_i32 = arith.constant 0 : i32
    %c0_i32_0 = arith.constant 0 : i32
    %c0_i32_1 = arith.constant 0 : i32
    return %c0_i32, %c0_i32_0 : i32, i32
  }
  func.func @transform_12(%arg0: i32) -> (i32, i32) {
    %c0_i32 = arith.constant 0 : i32
    %c0_i32_0 = arith.constant 0 : i32
    %c0_i32_1 = arith.constant 0 : i32
    return %c0_i32, %c0_i32_0 : i32, i32
  }
  func.func @transform_13(%arg0: i32) -> (i32, i32) {
    %c0_i32 = arith.constant 0 : i32
    %c0_i32_0 = arith.constant 0 : i32
    %c0_i32_1 = arith.constant 0 : i32
    return %c0_i32, %c0_i32_0 : i32, i32
  }
  func.func @transform_14(%arg0: i32) -> (i32, i32, i32) {
    %c0_i32 = arith.constant 0 : i32
    %c0_i32_0 = arith.constant 0 : i32
    %c0_i32_1 = arith.constant 0 : i32
    return %arg0, %c0_i32, %c0_i32_0 : i32, i32, i32
  }
}

</mosaic_0001>

<bundles_post_ra>
// kernel: xpool_transformer.2
= control target key start
LH: loop header
LB: loop body
LE: loop exit
PB: predicated region body
PF: predicated region fallthrough
CT: control target
= control target key end

     0   :  { %v670_v12 = vmov 0   ;;  %vm176_vm0 = vcmask 130048   ;;  %s873_s0 = inlined_call_operand.vmem [shape: f32[16,128], index: 0, kind: input, shape index: {}]   ;;  %s874_s1 = inlined_call_operand.vmem [shape: f32[4,32,128], index: 1, kind: input, shape index: {}]   ;;  %s875_s2 = inlined_call_operand.vmem [shape: f32[4,32,1], index: 2, kind: input, shape index: {}]   ;;  %s876_s3 = inlined_call_operand.vmem [shape: f32[1,128], index: 3, kind: input, shape index: {}]   ;;  %s877_s4 = inlined_call_operand.vmem [shape: f32[1,128], index: 4, kind: input, shape index: {}]   ;;  %s878_s5 = inlined_call_operand.vmem [shape: f32[4,32,16], index: 5, kind: output, shape index: {}]  }
   0x1   :  { %v20_v0 = vld [vmem:[%s873_s0] sm:$0xff]  ;;  %v21_v1 = vld [vmem:[%s873_s0 + $0x8] sm:$0xff]  ;;  %665 = vset.pattern.permute.xlu1 %v670_v12  ;;  %664 = vset.pattern.permute.xlu0 %v670_v12  ;;  %v69_v14 = vld [vmem:[%s875_s2 + $0x10] sm:$0xff] }
   0x2   :  { %24 = vadd.xlane.f32.xlu0 %v20_v0  ;;  %v63_v10 = vld [vmem:[%s874_s1] sm:$0xff]  ;;  %v68_v13 = vld [vmem:[%s875_s2 + $0x8] sm:$0xff]  ;;  %v70_v17 = vld [vmem:[%s875_s2 + $0x18] sm:$0xff] }
   0x3   :  { %v547_v11 = vld [vmem:[%s874_s1 + $0x20] sm:$0xff]  ;;  %611 = vmatprep.mubr.f32.mxu0 %v63_v10  ;;  %v564_v16 = vld [vmem:[%s875_s2 + $0x48] sm:$0xff]  ;;  %v566_v18 = vld [vmem:[%s875_s2 + $0x58] sm:$0xff] }
   0x4   :  { %621 = vmatprep.mubr.f32.mxu1 %v547_v11  ;;  %v67_v15 = vld [vmem:[%s875_s2] sm:$0xff]  ;;  %v576_v20 = vld [vmem:[%s875_s2 + $0x68] sm:$0xff]  ;;  %v578_v22 = vld [vmem:[%s875_s2 + $0x78] sm:$0xff] }
   0x5   :  { %v551_v19 = vld [vmem:[%s875_s2 + $0x20] sm:$0xff]  ;;  %v552_v21 = vld [vmem:[%s875_s2 + $0x28] sm:$0xff]  ;;  %v553_v23 = vld [vmem:[%s875_s2 + $0x30] sm:$0xff] }
   0x6   :  { %26 = vadd.xlane.f32.xlu0 %v21_v1  ;;  %v554_v24 = vld [vmem:[%s875_s2 + $0x38] sm:$0xff]  ;;  %v563_v25 = vld [vmem:[%s875_s2 + $0x40] sm:$0xff]  ;;  %v565_v26 = vld [vmem:[%s875_s2 + $0x50] sm:$0xff] }
   0x7   :  { %v575_v27 = vld [vmem:[%s875_s2 + $0x60] sm:$0xff]  ;;  %v577_v28 = vld [vmem:[%s875_s2 + $0x70] sm:$0xff]  ;;  %v64_v46 = vld [vmem:[%s874_s1 + $0x8] sm:$0xff] }
   0x8   :  { %v545_v37 = vld [vmem:[%s876_s3] ss:$0 sm:$0xff]  ;;  %v548_v47 = vld [vmem:[%s874_s1 + $0x28] sm:$0xff]  ;;  %v65_v48 = vld [vmem:[%s874_s1 + $0x10] sm:$0xff] }
   0x9   :  { %v546_v41 = vld [vmem:[%s877_s4] ss:$0 sm:$0xff]  ;;  %v549_v49 = vld [vmem:[%s874_s1 + $0x30] sm:$0xff]  ;;  %v66_v50 = vld [vmem:[%s874_s1 + $0x18] sm:$0xff] }
   0xa   :  { %v550_v51 = vld [vmem:[%s874_s1 + $0x38] sm:$0xff]  ;;  %v559_v52 = vld [vmem:[%s874_s1 + $0x40] sm:$0xff]  ;;  %v560_v54 = vld [vmem:[%s874_s1 + $0x48] sm:$0xff] }
   0xb   :  { %v571_v53 = vld [vmem:[%s874_s1 + $0x60] sm:$0xff]  ;;  %v572_v55 = vld [vmem:[%s874_s1 + $0x68] sm:$0xff]  ;;  %v561_v56 = vld [vmem:[%s874_s1 + $0x50] sm:$0xff] }
   0xc   :  { %v573_v57 = vld [vmem:[%s874_s1 + $0x70] sm:$0xff]  ;;  %v562_v58 = vld [vmem:[%s874_s1 + $0x58] sm:$0xff] }
   0xd   :  { %v574_v59 = vld [vmem:[%s874_s1 + $0x78] sm:$0xff] }
  0x1c   :  { %73 = vperm.xlu0 %664, %v67_v15  }
  0x20   :  { %318 = vperm.xlu0 %664, %v564_v16  }
  0x24   :  { %328 = vperm.xlu0 %664, %v566_v18  }
  0x28   :  { %438 = vperm.xlu0 %664, %v576_v20  }
  0x2c   :  { %448 = vperm.xlu0 %664, %v578_v22  }
  0x8f   :  { %v25_v2 = vpop.xlane.xlu0 %24 }
  0x90   :  { %v29_v3 = vmul.f32 0.0078125, %v25_v2 }
  0x92   :  { %v31_v4 = vsub.f32 %v20_v0, %v29_v3 }
  0x93   :  { %v27_v5 = vpop.xlane.xlu0 %26 }
  0x94   :  { %v30_v6 = vmul.f32 0.0078125, %v27_v5  ;;  %v33_v7 = vmul.f32 %v31_v4, %v31_v4 }
  0x96   :  { %v32_v8 = vsub.f32 %v21_v1, %v30_v6  ;;  %35 = vadd.xlane.f32.xlu1 %v33_v7 }
  0x98   :  { %v34_v9 = vmul.f32 %v32_v8, %v32_v8 }
  0x9a   :  { %37 = vadd.xlane.f32.xlu1 %v34_v9 }
  0x9b   :  { %v74_v3 = vpop.permute.xlu0 %73 }
  0x9f   :  { %v319_v5 = vpop.permute.xlu0 %318 }
  0xa3   :  { %v329_v7 = vpop.permute.xlu0 %328 }
  0xab   :  { %78 = vperm.xlu1 %665, %v68_v13  }
  0xaf   :  { %83 = vperm.xlu1 %665, %v69_v14  }
  0xb3   :  { %88 = vperm.xlu1 %665, %v70_v17   ;;  %v439_v17 = vpop.permute.xlu0 %438 }
  0xb7   :  { %193 = vperm.xlu1 %665, %v551_v19  }
  0xbb   :  { %198 = vperm.xlu1 %665, %v552_v21  }
  0xbf   :  { %203 = vperm.xlu1 %665, %v553_v23  }
  0xc3   :  { %208 = vperm.xlu1 %665, %v554_v24  }
  0xc7   :  { %313 = vperm.xlu1 %665, %v563_v25  }
  0xcb   :  { %323 = vperm.xlu1 %665, %v565_v26  }
  0xcf   :  { %433 = vperm.xlu1 %665, %v575_v27  }
  0xd3   :  { %443 = vperm.xlu1 %665, %v577_v28  }
 0x123   :  { %v36_v29 = vpop.xlane.xlu1 %35 }
 0x124   :  { %v39_v30 = vmul.f32 0.0078125, %v36_v29 }
 0x126   :  { %v41_v31 = vadd.f32 1e-05, %v39_v30 }
 0x127   :  { %v38_v32 = vpop.xlane.xlu1 %37 }
 0x128   :  { %666 = vrsqrt.f32 %v41_v31  ;;  %v40_v33 = vmul.f32 0.0078125, %v38_v32 }
 0x12a   :  { %v42_v34 = vadd.f32 1e-05, %v40_v33 }
 0x12b   :  { %v79_v60 = vpop.permute.xlu1 %78 }
 0x12c   :  { %668 = vrsqrt.f32 %v42_v34 }
 0x12f   :  { %v84_v61 = vpop.permute.xlu1 %83 }
 0x132   :  { %v667_v35 = vpop.eup %666 }
 0x133   :  { %v45_v36 = vmul.f32 %v667_v35, %v31_v4  ;;  %v89_v62 = vpop.permute.xlu1 %88  ;;  %v449_v35 = vpop.permute.xlu0 %448 }
 0x135   :  { %v53_v39 = vmul.f32 %v545_v37, %v45_v36 }
 0x136   :  { %v669_v38 = vpop.eup %668 }
 0x137   :  { %v46_v40 = vmul.f32 %v669_v38, %v32_v8  ;;  %v61_v43 = vadd.f32 %v546_v41, %v53_v39  ;;  %v194_v63 = vpop.permute.xlu1 %193 }
 0x139   :  { %v54_v42 = vmul.f32 %v545_v37, %v46_v40 }
 0x13b   :  { %v62_v44 = vadd.f32 %v546_v41, %v54_v42  ;;  %v199_v0 = vpop.permute.xlu1 %198 }
 0x13d   :  { %v647_v45 = vpack.c.bf16 %v62_v44, %v61_v43 }
 0x13f   :  { %648 = vmatprep.subr.bf16.mxu0 %v647_v45  ;;  %652 = vmatprep.subr.bf16.mxu1 %v647_v45  ;;  %v204_v1 = vpop.permute.xlu1 %203 }
 0x140   :  { %650 = vmatpush3.bf16.xpose.msra.mxu0 %v647_v45  ;;  %654 = vmatpush3.bf16.xpose.msra.mxu1 %v647_v45 }
 0x141   :  { %656 = vmatprep.subr.bf16.mxu0 %v647_v45  ;;  %660 = vmatprep.subr.bf16.mxu1 %v647_v45 }
 0x143   :  { %v209_v2 = vpop.permute.xlu1 %208 }
 0x147   :  { %612 = vmatmul.mubr.f32.vlgmr.msra.gmra.mrb[0].mxu0 %v64_v46  ;;  %622 = vmatmul.mubr.f32.vlgmr.msra.gmra.mrb[0].mxu1 %v548_v47  ;;  %v314_v4 = vpop.permute.xlu1 %313 }
 0x148   :  { %658 = vmatpush3.bf16.xpose.msra.mxu0 %v647_v45  ;;  %662 = vmatpush3.bf16.xpose.msra.mxu1 %v647_v45 }
 0x149   :  { %614 = vmatprep.mubr.f32.mxu0 %v65_v48  ;;  %624 = vmatprep.mubr.f32.mxu1 %v549_v49 }
 0x14b   :  { %615 = vmatmul.mubr.f32.gmra.mrb[2].mxu0 %v66_v50  ;;  %625 = vmatmul.mubr.f32.gmra.mrb[2].mxu1 %v550_v51  ;;  %v324_v6 = vpop.permute.xlu1 %323 }
 0x14c   :  { %631 = vmatprep.mubr.f32.mxu0 %v559_v52  ;;  %641 = vmatprep.mubr.f32.mxu1 %v571_v53 }
 0x14f   :  { %632 = vmatmul.mubr.f32.vlgmr.msra.gmra.mrb[4].mxu0 %v560_v54  ;;  %642 = vmatmul.mubr.f32.vlgmr.msra.gmra.mrb[4].mxu1 %v572_v55  ;;  %v434_v16 = vpop.permute.xlu1 %433 }
 0x150   :  { %634 = vmatprep.mubr.f32.mxu0 %v561_v56  ;;  %644 = vmatprep.mubr.f32.mxu1 %v573_v57 }
 0x153   :  { %635 = vmatmul.mubr.f32.gmra.mrb[6].mxu0 %v562_v58  ;;  %645 = vmatmul.mubr.f32.gmra.mrb[6].mxu1 %v574_v59  ;;  %v444_v34 = vpop.permute.xlu1 %443 }
 0x21a   :  { %v613_v8 = vpop.f32.mrb[0].mxu0  ;;  %v623_v9 = vpop.f32.mrb[0].mxu1 }
 0x21b   :  { %v163_v10 = vadd.f32 %v613_v8, %v79_v60  ;;  %v283_v11 = vadd.f32 %v623_v9, %v199_v0  ;;  %v157_v12 = vpop.f32.mrb[1].mxu0  ;;  %v277_v13 = vpop.f32.mrb[1].mxu1 }
 0x21c   :  { %v158_v14 = vadd.f32 %v157_v12, %v74_v3  ;;  %v278_v15 = vadd.f32 %v277_v13, %v194_v63 }
 0x21d   :  { %178 = vst.msk [vmem:[%s878_s5 + $0x8] sm:$0xff] %vm176_vm0, %v163_v10  ;;  %556 = vst.msk [vmem:[%s878_s5 + $0x28] sm:$0xff] %vm176_vm0, %v283_v11 }
 0x21e   :  { %177 = vst.msk [vmem:[%s878_s5] sm:$0xff] %vm176_vm0, %v158_v14  ;;  %555 = vst.msk [vmem:[%s878_s5 + $0x20] sm:$0xff] %vm176_vm0, %v278_v15  ;;  %v616_v18 = vpop.f32.mrb[2].mxu0  ;;  %v626_v19 = vpop.f32.mrb[2].mxu1 }
 0x21f   :  { %v173_v20 = vadd.f32 %v616_v18, %v89_v62  ;;  %v293_v21 = vadd.f32 %v626_v19, %v209_v2  ;;  %v167_v22 = vpop.f32.mrb[3].mxu0  ;;  %v287_v23 = vpop.f32.mrb[3].mxu1 }
 0x220   :  { %v168_v24 = vadd.f32 %v167_v22, %v84_v61  ;;  %v288_v25 = vadd.f32 %v287_v23, %v204_v1 }
 0x221   :  { %180 = vst.msk [vmem:[%s878_s5 + $0x18] sm:$0xff] %vm176_vm0, %v173_v20  ;;  %558 = vst.msk [vmem:[%s878_s5 + $0x38] sm:$0xff] %vm176_vm0, %v293_v21 }
 0x222   :  { %179 = vst.msk [vmem:[%s878_s5 + $0x10] sm:$0xff] %vm176_vm0, %v168_v24  ;;  %557 = vst.msk [vmem:[%s878_s5 + $0x30] sm:$0xff] %vm176_vm0, %v288_v25  ;;  %v633_v26 = vpop.f32.mrb[4].mxu0  ;;  %v643_v27 = vpop.f32.mrb[4].mxu1 }
 0x223   :  { %v403_v28 = vadd.f32 %v633_v26, %v319_v5  ;;  %v523_v29 = vadd.f32 %v643_v27, %v439_v17  ;;  %v397_v30 = vpop.f32.mrb[5].mxu0  ;;  %v517_v31 = vpop.f32.mrb[5].mxu1 }
 0x224   :  { %v398_v32 = vadd.f32 %v397_v30, %v314_v4  ;;  %v518_v33 = vadd.f32 %v517_v31, %v434_v16 }
 0x225   :  { %568 = vst.msk [vmem:[%s878_s5 + $0x48] sm:$0xff] %vm176_vm0, %v403_v28  ;;  %580 = vst.msk [vmem:[%s878_s5 + $0x68] sm:$0xff] %vm176_vm0, %v523_v29 }
 0x226   :  { %567 = vst.msk [vmem:[%s878_s5 + $0x40] sm:$0xff] %vm176_vm0, %v398_v32  ;;  %579 = vst.msk [vmem:[%s878_s5 + $0x60] sm:$0xff] %vm176_vm0, %v518_v33  ;;  %v636_v36 = vpop.f32.mrb[6].mxu0  ;;  %v646_v37 = vpop.f32.mrb[6].mxu1 }
 0x227   :  { %v413_v38 = vadd.f32 %v636_v36, %v329_v7  ;;  %v533_v39 = vadd.f32 %v646_v37, %v449_v35  ;;  %v407_v40 = vpop.f32.mrb[7].mxu0  ;;  %v527_v41 = vpop.f32.mrb[7].mxu1 }
 0x228   :  { %v408_v42 = vadd.f32 %v407_v40, %v324_v6  ;;  %v528_v43 = vadd.f32 %v527_v41, %v444_v34 }
 0x229   :  { %570 = vst.msk [vmem:[%s878_s5 + $0x58] sm:$0xff] %vm176_vm0, %v413_v38  ;;  %582 = vst.msk [vmem:[%s878_s5 + $0x78] sm:$0xff] %vm176_vm0, %v533_v39 }
 0x22a   :  { %569 = vst.msk [vmem:[%s878_s5 + $0x50] sm:$0xff] %vm176_vm0, %v408_v42  ;;  %581 = vst.msk [vmem:[%s878_s5 + $0x70] sm:$0xff] %vm176_vm0, %v528_v43 }

// kernel: xpool_transformer.3
= control target key start
LH: loop header
LB: loop body
LE: loop exit
PB: predicated region body
PF: predicated region fallthrough
CT: control target
= control target key end

     0   :  { %s3539_s29 = smov 0   ;;  %s3941_s0 = inlined_call_operand.vmem [shape: f32[4,32,16], index: 0, kind: input, shape index: {}]   ;;  %s3942_s1 = inlined_call_operand.vmem [shape: f32[4,8,128], index: 1, kind: input, shape index: {}]   ;;  %s3943_s2 = inlined_call_operand.vmem [shape: f32[128,256], index: 2, kind: input, shape index: {}]   ;;  %s3944_s3 = inlined_call_operand.vmem [shape: f32[1,256], index: 3, kind: input, shape index: {}]   ;;  %s3945_s4 = inlined_call_operand.vmem [shape: f32[4,32,128], index: 4, kind: input, shape index: {}]   ;;  %s3946_s5 = inlined_call_operand.vmem [shape: f32[1,128], index: 5, kind: input, shape index: {}]   ;;  %s3947_s6 = inlined_call_operand.vmem [shape: f32[128,128], index: 6, kind: input, shape index: {}]   ;;  %s3948_s7 = inlined_call_operand.vmem [shape: f32[1,128], index: 7, kind: input, shape index: {}]   ;;  %s3949_s8 = inlined_call_operand.vmem [shape: f32[1,128], index: 8, kind: input, shape index: {}]   ;;  %s3950_s9 = inlined_call_operand.vmem [shape: f32[1,128], index: 9, kind: input, shape index: {}]   ;;  %s3951_s10 = inlined_call_operand.vmem [shape: f32[1,128], index: 10, kind: input, shape index: {}]   ;;  %s3952_s11 = inlined_call_operand.vmem [shape: f32[1,128], index: 11, kind: input, shape index: {}]   ;;  %s3953_s12 = inlined_call_operand.vmem [shape: f32[1,128], index: 12, kind: input, shape index: {}]   ;;  %s3954_s13 = inlined_call_operand.vmem [shape: f32[1,128], index: 13, kind: input, shape index: {}]   ;;  %s3955_s14 = inlined_call_operand.vmem [shape: f32[4,16,128], index: 14, kind: output, shape index: {}]  }
   0x1 LB: > { %s2883_s30 = sadd.s32 4294967295, %s3457_s29   ;;  %p2887_p0 = scmp.ge.s32.totalorder %s3457_s29, 1  ;;  %s3457_s29 = sphi %s3539_s29, %s24_s29  }
   0x2   : > { %p413_p1 = scmp.lt.s32.totalorder %s3457_s29, 3 }
   0x4   : > { %p414_p2 = pnand %p2887_p0, %p413_p1 }
   0x5   : > { %s2888_s15 = sshll.u32 (!%p414_p2), %s2883_s30, 1  ;;  %v517_v2 = vld [vmem:[%s3943_s2 + $0x8] sm:$0xff] (!%p414_p2)  ;;  %v519_v3 = vld [vmem:[%s3943_s2 + $0x18] sm:$0xff] (!%p414_p2)  ;;  %v516_v4 = vld [vmem:[%s3943_s2] sm:$0xff] (!%p414_p2)  ;;  %v3459_v53 = vmov (!%p414_p2), 0.0   ;;  %vm653_vm0 = vcmask (!%p414_p2), 261120  }
   0x6   : > { %417 = sbr.rel (%p414_p2) target bundleno = 3697 (0xe71), region = 76  ;;  %p461_p3 = scmp.lt.s32.totalorder (!%p414_p2), %s2888_s15, 3  ;;  %v3246_v5 = vpack.c.bf16 (!%p414_p2), %v519_v3, %v517_v2  ;;  %v518_v6 = vld [vmem:[%s3943_s2 + $0x10] sm:$0xff] (!%p414_p2)  ;;  %v521_v7 = vld [vmem:[%s3943_s2 + $0x28] sm:$0xff] (!%p414_p2)  ;;  %v523_v8 = vld [vmem:[%s3943_s2 + $0x38] sm:$0xff] (!%p414_p2)  ;;  %624 = vmatprep.mubr.f32.mxu0 (!%p414_p2), %v3459_v53  ;;  %vm739_vm2 = vcmask (!%p414_p2), 130048  }
   0x7   : > { %v3248_v9 = vpack.c.bf16 (!%p414_p2), %v518_v6, %v516_v4  ;;  %v3250_v10 = vpack.c.bf16 (!%p414_p2), %v523_v8, %v521_v7  ;;  %v520_v11 = vld [vmem:[%s3943_s2 + $0x20] sm:$0xff] (!%p414_p2)  ;;  %v522_v12 = vld [vmem:[%s3943_s2 + $0x30] sm:$0xff] (!%p414_p2)  ;;  %v525_v13 = vld [vmem:[%s3943_s2 + $0x48] sm:$0xff] (!%p414_p2)  ;;  %s3461_s22 = smov (!%p414_p2), 96   ;;  %s3462_s23 = smov (!%p414_p2), 64   ;;  %vm842_vm3 = vcmask (!%p414_p2), 64512  }
   0x8   : > { %3247 = vmatprep.subr.bf16.mxu0 (!%p414_p2), %v3246_v5  ;;  %v527_v14 = vld [vmem:[%s3943_s2 + $0x58] sm:$0xff] (!%p414_p2)  ;;  %v3252_v15 = vpack.c.bf16 (!%p414_p2), %v522_v12, %v520_v11  ;;  %v524_v17 = vld [vmem:[%s3943_s2 + $0x40] sm:$0xff] (!%p414_p2)  ;;  %v526_v18 = vld [vmem:[%s3943_s2 + $0x50] sm:$0xff] (!%p414_p2)  ;;  %s3463_s27 = smov (!%p414_p2), 32  }
   0x9   : > { %3249 = vmatpush1.bf16.msra.mxu0 (!%p414_p2), %v3248_v9  ;;  %v3254_v16 = vpack.c.bf16 (!%p414_p2), %v527_v14, %v525_v13  ;;  %v3256_v19 = vpack.c.bf16 (!%p414_p2), %v526_v18, %v524_v17  ;;  %v529_v28 = vld [vmem:[%s3943_s2 + $0x68] sm:$0xff] (!%p414_p2)  ;;  %v531_v29 = vld [vmem:[%s3943_s2 + $0x78] sm:$0xff] (!%p414_p2)  ;;  %v528_v31 = vld [vmem:[%s3943_s2 + $0x60] sm:$0xff] (!%p414_p2)  ;;  %v550_v17 = vlaneseq (!%p414_p2) }
   0xa   : > { %3251 = vmatprep.subr.bf16.mxu0 (!%p414_p2), %v3250_v10  ;;  %v3258_v30 = vpack.c.bf16 (!%p414_p2), %v531_v29, %v529_v28  ;;  %v530_v32 = vld [vmem:[%s3943_s2 + $0x70] sm:$0xff] (!%p414_p2)  ;;  %v533_v34 = vld [vmem:[%s3943_s2 + $0x88] sm:$0xff] (!%p414_p2)  ;;  %v535_v35 = vld [vmem:[%s3943_s2 + $0x98] sm:$0xff] (!%p414_p2) }
   0xb   : > { %v3260_v33 = vpack.c.bf16 (!%p414_p2), %v530_v32, %v528_v31  ;;  %v3262_v36 = vpack.c.bf16 (!%p414_p2), %v535_v35, %v533_v34  ;;  %v532_v37 = vld [vmem:[%s3943_s2 + $0x80] sm:$0xff] (!%p414_p2)  ;;  %v534_v38 = vld [vmem:[%s3943_s2 + $0x90] sm:$0xff] (!%p414_p2)  ;;  %v537_v40 = vld [vmem:[%s3943_s2 + $0xa8] sm:$0xff] (!%p414_p2)  ;;  %v551_v18 = vshrl.u32 (!%p414_p2), %v550_v17, 7  ;;  %v3460_v32 = vmov (!%p414_p2), -1e+30  }
   0xc   : > { %v3264_v39 = vpack.c.bf16 (!%p414_p2), %v534_v38, %v532_v37  ;;  %v539_v41 = vld [vmem:[%s3943_s2 + $0xb8] sm:$0xff] (!%p414_p2)  ;;  %v536_v43 = vld [vmem:[%s3943_s2 + $0xa0] sm:$0xff] (!%p414_p2)  ;;  %v538_v44 = vld [vmem:[%s3943_s2 + $0xb0] sm:$0xff] (!%p414_p2) }
   0xd   : > { %s3957_s15 = smov (!%p461_p3, %s2888_s15), 3  ;;  %3253 = vmatpush1.bf16.msra.mxu0 %v3252_v15  ;;  %v3266_v42 = vpack.c.bf16 %v539_v41, %v537_v40  ;;  %v3268_v45 = vpack.c.bf16 %v538_v44, %v536_v43  ;;  %v541_v46 = vld [vmem:[%s3943_s2 + $0xc8] sm:$0xff]  ;;  %v543_v47 = vld [vmem:[%s3943_s2 + $0xd8] sm:$0xff]  ;;  %v540_v48 = vld [vmem:[%s3943_s2 + $0xc0] sm:$0xff]  ;;  %vm643_vm1 = vcmp.lt.s32.totalorder %v551_v18, 6 }
   0xe   : > { %s2889_s16 = sshll.u32 %s3957_s15, 3  ;;  %3255 = vmatprep.subr.bf16.mxu0 %v3254_v16  ;;  %v3270_v49 = vpack.c.bf16 %v543_v47, %v541_v46  ;;  %v542_v50 = vld [vmem:[%s3943_s2 + $0xd0] sm:$0xff]  ;;  %v545_v51 = vld [vmem:[%s3943_s2 + $0xe8] sm:$0xff]  ;;  %v547_v52 = vld [vmem:[%s3943_s2 + $0xf8] sm:$0xff]  ;;  %s2967_s17 = sshll.u32 %s3957_s15, 4 }
   0xf   : > { %s464_s19 = scalar_lea.vmem %s3942_s1, %s2889_s16  ;;  %v3272_v54 = vpack.c.bf16 %v542_v50, %v540_v48  ;;  %v3274_v55 = vpack.c.bf16 %v547_v52, %v545_v51  ;;  %v544_v56 = vld [vmem:[%s3943_s2 + $0xe0] sm:$0xff]  ;;  %v546_v57 = vld [vmem:[%s3943_s2 + $0xf0] sm:$0xff]  ;;  %v650_v60 = vld [vmem:[%s3941_s0 + $0x8] sm:$0xff] }
  0x10   : > { %v473_v0 = vld [vmem:[%s464_s19] sm:$0xff]  ;;  %v474_v1 = vld [vmem:[%s464_s19 + $0x8] sm:$0xff]  ;;  %v3276_v58 = vpack.c.bf16 %v546_v57, %v544_v56  ;;  %v651_v14 = vld [vmem:[%s3941_s0 + $0x10] sm:$0xff] }
  0x11   : > { %477 = vadd.xlane.f32.xlu0 %v473_v0  ;;  %3257 = vmatpush1.bf16.msra.mxu0 %v3256_v19  ;;  %v649_v59 = vld [vmem:[%s3941_s0] sm:$0xff]  ;;  %v652_v15 = vld [vmem:[%s3941_s0 + $0x18] sm:$0xff]  ;;  %v552_v19 = vsub.s32 0, %v551_v18  ;;  %v2925_v17 = vld [vmem:[%s3941_s0 + $0x50] sm:$0xff] }
  0x12   : > { %3259 = vmatprep.subr.bf16.mxu0 %v3258_v30  ;;  %v3278_v61 = vpack.c.bf16 %v650_v60, %v649_v59  ;;  %v2893_v5 = vld [vmem:[%s3949_s8] ss:$0 sm:$0xff]  ;;  %v3282_v16 = vpack.c.bf16 %v652_v15, %v651_v14  ;;  %v2924_v15 = vld [vmem:[%s3941_s0 + $0x48] sm:$0xff] }
  0x13   : > { %v2894_v7 = vld [vmem:[%s3950_s9] ss:$0 sm:$0xff] }
  0x14   : > { %3279 = vmatprep.subr.bf16.mxu1 %v3278_v61  ;;  %v2923_v14 = vld [vmem:[%s3941_s0 + $0x40] sm:$0xff] }
  0x15   : > { %479 = vadd.xlane.f32.xlu0 %v474_v1  ;;  %3261 = vmatpush1.bf16.msra.mxu0 %v3260_v33  ;;  %v3695_v33 = vsel %vm643_vm1, 0.0, %v3460_v32 }
  0x16   : > { %3263 = vmatprep.subr.bf16.mxu0 %v3262_v36  ;;  %3281 = vmatpush3.bf16.msra.mxu1 %v3278_v61 }
  0x17   : > { %3283 = vmatprep.subr.bf16.mxu1 %v3282_v16 }
  0x19   : > { %3265 = vmatpush1.bf16.msra.mxu0 %v3264_v39 }
  0x1a   : > { %3267 = vmatprep.subr.bf16.mxu0 %v3266_v42  ;;  %3285 = vmatpush3.bf16.msra.mxu1 %v3282_v16  ;;  %v3310_v16 = vpack.c.bf16 %v2924_v15, %v2923_v14 }
  0x1d   : > { %3269 = vmatpush1.bf16.msra.mxu0 %v3268_v45 }
  0x1e   : > { %3271 = vmatprep.subr.bf16.mxu0 %v3270_v49 }
  0x21   : > { %3273 = vmatpush1.bf16.msra.mxu0 %v3272_v54 }
  0x22   : > { %3275 = vmatprep.subr.bf16.mxu0 %v3274_v55 }
  0x25   : > { %3277 = vmatpush1.bf16.msra.mxu0 %v3276_v58 }
  0x26   : > { %3311 = vmatprep.subr.bf16.mxu0 %v3310_v16 }
  0x9e   : > { %v478_v20 = vpop.xlane.xlu0 %477 }
  0x9f   : > { %v482_v21 = vmul.f32 0.0078125, %v478_v20  ;;  %v548_v20 = vld [vmem:[%s3944_s3] sm:$0x3] }
  0xa1   : > { %v3589_v22 = vsub.f32 %v473_v0, %v482_v21  ;;  %v556_v21 = vsub.s32 1, %v551_v18  ;;  %v2926_v18 = vld [vmem:[%s3941_s0 + $0x58] sm:$0xff] }
  0xa2   : > { %v480_v23 = vpop.xlane.xlu0 %479 }
  0xa3   : > { %v483_v24 = vmul.f32 0.0078125, %v480_v23  ;;  %v486_v25 = vmul.f32 %v3589_v22, %v3589_v22  ;;  %v557_v23 = vrot.slane %v548_v20, %v556_v21 }
  0xa5   : > { %v3593_v26 = vsub.f32 %v474_v1, %v483_v24  ;;  %488 = vadd.xlane.f32.xlu1 %v486_v25 }
  0xa7   : > { %v487_v27 = vmul.f32 %v3593_v26, %v3593_v26 }
  0xa9   : > { %490 = vadd.xlane.f32.xlu1 %v487_v27 }
 0x132   : > { %v489_v62 = vpop.xlane.xlu1 %488 }
 0x133   : > { %v492_v63 = vmul.f32 0.0078125, %v489_v62 }
 0x135   : > { %v494_v0 = vadd.f32 1e-05, %v492_v63 }
 0x136   : > { %v491_v1 = vpop.xlane.xlu1 %490 }
 0x137   : > { %3399 = vrsqrt.f32 %v494_v0  ;;  %v493_v2 = vmul.f32 0.0078125, %v491_v1 }
 0x139   : > { %v495_v3 = vadd.f32 1e-05, %v493_v2 }
 0x13b   : > { %3401 = vrsqrt.f32 %v495_v3 }
 0x141   : > { %v3400_v4 = vpop.eup %3399 }
 0x142   : > { %v498_v6 = vmul.f32 %v3400_v4, %v3589_v22  ;;  %v553_v22 = vrot.slane %v548_v20, %v552_v19  ;;  %v3314_v19 = vpack.c.bf16 %v2926_v18, %v2925_v17 }
 0x144   : > { %v506_v8 = vmul.f32 %v2893_v5, %v498_v6 }
 0x145   : > { %v3402_v9 = vpop.eup %3401 }
 0x146   : > { %v514_v10 = vadd.f32 %v2894_v7, %v506_v8  ;;  %v499_v11 = vmul.f32 %v3402_v9, %v3593_v26 }
 0x148   : > { %625 = vmatmul.mubr.f32.vlgmr.msra.gmra.mrb[0].mxu0 %v514_v10  ;;  %v507_v12 = vmul.f32 %v2893_v5, %v499_v11 }
 0x149   : > { %630 = vmatprep.mubr.f32.mxu0 %v3459_v53  ;;  %3313 = vmatpush3.bf16.msra.mxu0 %v3310_v16 }
 0x14a   : > { %v515_v13 = vadd.f32 %v2894_v7, %v507_v12  ;;  %3315 = vmatprep.subr.bf16.mxu0 %v3314_v19 }
 0x14c   : > { %631 = vmatmul.mubr.f32.gmra.mrb[2].mxu0 %v515_v13 }
 0x14d   : > { %3317 = vmatpush3.bf16.msra.mxu0 %v3314_v19 }
 0x21b   : > { %v626_v24 = vpop.f32.mrb[0].mxu0 }
 0x21c   : > { %v3680_v25 = vadd.f32 %v626_v24, %v553_v22  ;;  %v628_v26 = vpop.f32.mrb[1].mxu0 }
 0x21d   : > { %v3682_v27 = vadd.f32 %v628_v26, %v557_v23 }
 0x21e   : > { %3076 = vmatprep.mubr.msk.f32.mxu1 %vm653_vm0, %v3680_v25 }
 0x21f   : > { %v632_v28 = vpop.f32.mrb[2].mxu0  ;;  %3079 = vmatprep.subr.mxu1 %v3682_v27 }
 0x220   : > { %v3687_v29 = vadd.f32 %v632_v28, %v553_v22  ;;  %v634_v30 = vpop.f32.mrb[3].mxu0  ;;  %v1005_v22 = vld [vmem:[%s3945_s4] sm:$0xff]  ;;  %v1007_v28 = vld [vmem:[%s3945_s4 + $0x10] sm:$0xff] }
 0x221   : > { %v3689_v31 = vadd.f32 %v634_v30, %v557_v23  ;;  %v1006_v23 = vld [vmem:[%s3945_s4 + $0x8] sm:$0xff]  ;;  %v1008_v30 = vld [vmem:[%s3945_s4 + $0x18] sm:$0xff] }
 0x222   : > { %3077 = vmatmul.mubr.msk.f32.vlgmr.msra.gmra.mrb[0].mxu1 %vm653_vm0, %v3687_v29  ;;  %v3286_v24 = vpack.c.bf16 %v1006_v23, %v1005_v22 }
 0x223   : > { %3080 = vmatpush3.msra.mxu1 %v3682_v27 }
 0x224   : > { %3084 = vmatprep.subr.mxu1 %v3689_v31 }
 0x2f5   : > { %v3078_v34 = vpop.f32.mrb[0].mxu1 }
 0x2f6   : > { %v736_v35 = vmul.f32 0.17677669, %v3078_v34  ;;  %v726_v36 = vpop.f32.mrb[1].mxu1  ;;  %v3290_v34 = vpack.c.bf16 %v1008_v30, %v1007_v28 }
 0x2f7   : > { %v735_v37 = vmul.f32 0.17677669, %v726_v36 }
 0x2f8   : > { %v738_v38 = vadd.f32 %v736_v35, %v3695_v33 }
 0x2f9   : > { %v737_v39 = vadd.f32 %v735_v37, %v3695_v33 }
 0x2fa   : > { %v747_v40 = vsel %vm739_vm2, %v738_v38, -inf }
 0x2fb   : > { %v748_v41 = vrot.slane %v747_v40, 4  ;;  %v740_v42 = vsel %vm739_vm2, %v737_v39, -inf }
 0x2fc   : > { %v741_v43 = vrot.slane %v740_v42, 4 }
 0x2fd   : > { %v749_v44 = vmax.f32 %v747_v40, %v748_v41  ;;  %v2907_v41 = vld [vmem:[%s3941_s0 + $0x30] sm:$0xff] }
 0x2fe   : > { %v742_v45 = vmax.f32 %v740_v42, %v741_v43  ;;  %v2908_v42 = vld [vmem:[%s3941_s0 + $0x38] sm:$0xff] }
 0x2ff   : > { %v750_v46 = vrot.slane %v749_v44, 2 }
 0x300   : > { %v743_v47 = vrot.slane %v742_v45, 2 }
 0x301   : > { %v751_v48 = vmax.f32 %v749_v44, %v750_v46 }
 0x302   : > { %v744_v49 = vmax.f32 %v742_v45, %v743_v47  ;;  %v3298_v45 = vpack.c.bf16 %v2908_v42, %v2907_v41 }
 0x303   : > { %v752_v50 = vrot.slane %v751_v48, 1 }
 0x304   : > { %v745_v51 = vrot.slane %v744_v49, 1 }
 0x305   : > { %v753_v52 = vmax.f32 %v751_v48, %v752_v50 }
 0x306   : > { %v746_v53 = vmax.f32 %v744_v49, %v745_v51 }
 0x307   : > { %v755_v54 = vsub.f32 %v738_v38, %v753_v52  ;;  %v2905_v38 = vld [vmem:[%s3941_s0 + $0x20] sm:$0xff] }
 0x308   : > { %v754_v55 = vsub.f32 %v737_v39, %v746_v53  ;;  %v2906_v39 = vld [vmem:[%s3941_s0 + $0x28] sm:$0xff] }
 0x309   : > { %v758_v56 = vmul.f32 1.442695, %v755_v54  ;;  %v3294_v40 = vpack.c.bf16 %v2906_v39, %v2905_v38 }
 0x30a   : > { %v756_v57 = vmul.f32 1.442695, %v754_v55 }
 0x30b   : > { %3403 = vpow2.f32 %v758_v56 }
 0x30c   : > { %3405 = vpow2.f32 %v756_v57 }
 0x315   : > { %v3404_v58 = vpop.eup %3403 }
 0x316   : > { %v3406_v59 = vpop.eup %3405  ;;  %v767_v60 = vsel %vm739_vm2, %v3404_v58, 0.0 }
 0x317   : > { %v768_v61 = vrot.slane %v767_v60, 4  ;;  %v760_v62 = vsel %vm739_vm2, %v3406_v59, 0.0 }
 0x318   : > { %v761_v63 = vrot.slane %v760_v62, 4 }
 0x319   : > { %v769_v0 = vadd.f32 %v768_v61, %v767_v60 }
 0x31a   : > { %v762_v1 = vadd.f32 %v761_v63, %v760_v62 }
 0x31b   : > { %v770_v2 = vrot.slane %v769_v0, 2 }
 0x31c   : > { %v763_v3 = vrot.slane %v762_v1, 2 }
 0x31d   : > { %v771_v4 = vadd.f32 %v770_v2, %v769_v0 }
 0x31e   : > { %v764_v5 = vadd.f32 %v763_v3, %v762_v1 }
 0x31f   : > { %v772_v6 = vrot.slane %v771_v4, 1 }
 0x320   : > { %v765_v7 = vrot.slane %v764_v5, 1 }
 0x321   : > { %v773_v8 = vadd.f32 %v772_v6, %v771_v4 }
 0x322   : > { %v766_v9 = vadd.f32 %v765_v7, %v764_v5 }
 0x323   : > { %3407 = vrcp.f32 %v773_v8 }
 0x324   : > { %3409 = vrcp.f32 %v766_v9 }
 0x32d   : > { %v3408_v10 = vpop.eup %3407 }
 0x32e   : > { %v3410_v11 = vpop.eup %3409  ;;  %v777_v12 = vmul.f32 %v3408_v10, %v3404_v58 }
 0x32f   : > { %v775_v13 = vmul.f32 %v3410_v11, %v3406_v59 }
 0x330   : > { %810 = vxpose.xlu1.b32.start.end [1/1] (short) (narrow) %v777_v12, 16 }
 0x331   : > { %778 = vxpose.xlu0.b32.start.end [1/1] (short) (narrow) %v775_v13, 16 }
 0x352   : > { %1123 = vrot.lane.b32.xlu1 %v3687_v29, %s3461_s22 }
 0x356   : > { %1605 = vrot.lane.b32.xlu1 %v3680_v25, %s3462_s23 }
 0x35a   : > { %1607 = vrot.lane.b32.xlu1 %v3687_v29, %s3462_s23 }
 0x35e   : > { %1396 = vrot.lane.b32.xlu1 %v3689_v31, %s3461_s22  ;;  %1121 = vrot.lane.b32.xlu0 %v3680_v25, %s3461_s22 }
 0x362   : > { %1311 = vrot.lane.b32.xlu0 %v3682_v27, %s3461_s22  ;;  %s471_s22 = scalar_lea.vmem %s3955_s14, %s2967_s17 }
 0x3b0   : > { %v826_v21 = vpop.trf.xlu1 }
 0x3b1   : > { %v794_v20 = vpop.trf.xlu0 }
 0x3b2   : > { %3081 = vmatprep.mubr.msk.f32.mxu1 %vm842_vm3, %v794_v20 }
 0x3b4   : > { %v827_v32 = vpop.trf.xlu1 }
 0x3b5   : > { %v795_v26 = vpop.trf.xlu0 }
 0x3b6   : > { %3082 = vmatmul.mubr.msk.f32.vlgmr.msra.gmra.mrb[2].mxu1 %vm842_vm3, %v795_v26 }
 0x3b7   : > { %3085 = vmatpush3.msra.mxu1 %v3689_v31  ;;  %3086 = vmatprep.mubr.msk.f32.mxu1 %vm842_vm3, %v826_v21 }
 0x3b8   : > { %3287 = vmatprep.subr.bf16.mxu1 %v3286_v24 }
 0x3ba   : > { %3087 = vmatmul.mubr.msk.f32.vlgmr.msra.gmra.mrb[4].mxu1 %vm842_vm3, %v827_v32 }
 0x3bb   : > { %3289 = vmatpush3.bf16.msra.mxu1 %v3286_v24 }
 0x3bc   : > { %3291 = vmatprep.subr.bf16.mxu1 %v3290_v34 }
 0x3bf   : > { %3293 = vmatpush3.bf16.msra.mxu1 %v3290_v34 }
 0x3c0   : > { %3295 = vmatprep.subr.bf16.mxu1 %v3294_v40 }
 0x3c4   : > { %v1124_v35 = vpop.permute.xlu1 %1123 }
 0x3c8   : > { %v1606_v36 = vpop.permute.xlu1 %1605 }
 0x3c9   : > { %3146 = vmatprep.mubr.msk.f32.mxu0 %vm653_vm0, %v1606_v36 }
 0x3cc   : > { %v1608_v37 = vpop.permute.xlu1 %1607 }
 0x3cd   : > { %3147 = vmatmul.mubr.msk.f32.vlgmr.msra.gmra.mrb[4].mxu0 %vm653_vm0, %v1608_v37 }
 0x3d0   : > { %v1122_v46 = vpop.permute.xlu0 %1121  ;;  %v3760_v50 = vpop.permute.xlu1 %1396 }
 0x3d4   : > { %v1312_v49 = vpop.permute.xlu0 %1311 }
 0x489   : > { %v3083_v43 = vpop.f32.mrb[2].mxu1 }
 0x48a   : > { %v915_v44 = vpop.f32.mrb[3].mxu1 }
 0x48b   : > { %3097 = vmatprep.mubr.msk.f32.mxu1 %vm653_vm0, %v915_v44 }
 0x48c   : > { %3098 = vmatmul.mubr.msk.f32.vlgmr.msra.gmra.mrb[6].mxu1 %vm653_vm0, %v3083_v43 }
 0x48d   : > { %3297 = vmatpush3.bf16.msra.mxu1 %v3294_v40  ;;  %v3088_v47 = vpop.f32.mrb[4].mxu1 }
 0x48e   : > { %v996_v48 = vpop.f32.mrb[5].mxu1  ;;  %3299 = vmatprep.subr.bf16.mxu1 %v3298_v45 }
 0x48f   : > { %3100 = vmatprep.mubr.msk.f32.mxu1 %vm653_vm0, %v996_v48 }
 0x490   : > { %3101 = vmatmul.mubr.msk.f32.gmra.mrb[8].mxu1 %vm653_vm0, %v3088_v47 }
 0x491   : > { %3301 = vmatpush3.bf16.msra.mxu1 %v3298_v45  ;;  %3111 = vmatprep.mubr.msk.f32.mxu1 %vm653_vm0, %v1122_v46 }
 0x492   : > { %3114 = vmatprep.subr.mxu1 %v1312_v49 }
 0x494   : > { %3112 = vmatmul.mubr.msk.f32.vlgmr.msra.gmra.mrb[10].mxu1 %vm653_vm0, %v1124_v35 }
 0x495   : > { %3115 = vmatpush3.msra.mxu1 %v1312_v49 }
 0x496   : > { %3119 = vmatprep.subr.mxu1 %v3760_v50 }
 0x4a0   : > { %v3148_v51 = vpop.f32.mrb[4].mxu0 }
 0x4a1   : > { %v1679_v52 = vpop.f32.mrb[5].mxu0  ;;  %v1689_v19 = vmul.f32 0.17677669, %v3148_v51 }
 0x4a2   : > { %v1688_v21 = vmul.f32 0.17677669, %v1679_v52 }
 0x4a3   : > { %v1691_v26 = vadd.f32 %v1689_v19, %v3695_v33  ;;  %v2915_v19 = vld [vmem:[%s3945_s4 + $0x20] sm:$0xff] }
 0x4a4   : > { %v1690_v30 = vadd.f32 %v1688_v21, %v3695_v33 }
 0x4a5   : > { %v1699_v36 = vsel %vm739_vm2, %v1691_v26, -inf }
 0x4a6   : > { %v1692_v38 = vsel %vm739_vm2, %v1690_v30, -inf  ;;  %v1700_v40 = vrot.slane %v1699_v36, 4 }
 0x4a7   : > { %v1693_v41 = vrot.slane %v1692_v38, 4 }
 0x4a8   : > { %v1701_v42 = vmax.f32 %v1699_v36, %v1700_v40 }
 0x4a9   : > { %v1694_v43 = vmax.f32 %v1692_v38, %v1693_v41  ;;  %v2934_v38 = vld [vmem:[%s3945_s4 + $0x48] sm:$0xff] }
 0x4aa   : > { %v1702_v44 = vrot.slane %v1701_v42, 2 }
 0x4ab   : > { %v1695_v46 = vrot.slane %v1694_v43, 2 }
 0x4ac   : > { %v1703_v51 = vmax.f32 %v1701_v42, %v1702_v44  ;;  %v2935_v44 = vld [vmem:[%s3945_s4 + $0x50] sm:$0xff] }
 0x4ad   : > { %v1696_v52 = vmax.f32 %v1694_v43, %v1695_v46 }
 0x567   : > { %v3113_v53 = vpop.f32.mrb[10].mxu1 }
 0x568   : > { %v1205_v54 = vmul.f32 0.17677669, %v3113_v53  ;;  %v1195_v55 = vpop.f32.mrb[11].mxu1  ;;  %v1704_v53 = vrot.slane %v1703_v51, 1 }
 0x569   : > { %v1204_v56 = vmul.f32 0.17677669, %v1195_v55 }
 0x56a   : > { %v1207_v57 = vadd.f32 %v1205_v54, %v3695_v33  ;;  %v1697_v54 = vrot.slane %v1696_v52, 1  ;;  %v1705_v55 = vmax.f32 %v1703_v51, %v1704_v53  ;;  %v2943_v53 = vld [vmem:[%s3941_s0 + $0x70] sm:$0xff] }
 0x56b   : > { %v1206_v58 = vadd.f32 %v1204_v56, %v3695_v33 }
 0x56c   : > { %v1215_v59 = vsel %vm739_vm2, %v1207_v57, -inf  ;;  %v1698_v56 = vmax.f32 %v1696_v52, %v1697_v54  ;;  %v2944_v54 = vld [vmem:[%s3941_s0 + $0x78] sm:$0xff] }
 0x56d   : > { %v1216_v60 = vrot.slane %v1215_v59, 4  ;;  %v1208_v61 = vsel %vm739_vm2, %v1206_v58, -inf }
 0x56e   : > { %v1209_v62 = vrot.slane %v1208_v61, 4 }
 0x56f   : > { %v1217_v63 = vmax.f32 %v1215_v59, %v1216_v60 }
 0x570   : > { %v1210_v0 = vmax.f32 %v1208_v61, %v1209_v62 }
 0x571   : > { %v1218_v1 = vrot.slane %v1217_v63, 2 }
 0x572   : > { %v1211_v2 = vrot.slane %v1210_v0, 2 }
 0x573   : > { %v1219_v3 = vmax.f32 %v1217_v63, %v1218_v1 }
 0x574   : > { %v1212_v4 = vmax.f32 %v1210_v0, %v1211_v2 }
 0x575   : > { %v1220_v5 = vrot.slane %v1219_v3, 1 }
 0x576   : > { %v1213_v6 = vrot.slane %v1212_v4, 1 }
 0x577   : > { %v1221_v7 = vmax.f32 %v1219_v3, %v1220_v5 }
 0x578   : > { %v1214_v8 = vmax.f32 %v1212_v4, %v1213_v6 }
 0x579   : > { %v1223_v9 = vsub.f32 %v1207_v57, %v1221_v7  ;;  %v1707_v57 = vsub.f32 %v1691_v26, %v1705_v55  ;;  %v3330_v55 = vpack.c.bf16 %v2944_v54, %v2943_v53 }
 0x57a   : > { %v1222_v10 = vsub.f32 %v1206_v58, %v1214_v8  ;;  %v1706_v58 = vsub.f32 %v1690_v30, %v1698_v56 }
 0x57b   : > { %v1226_v11 = vmul.f32 1.442695, %v1223_v9  ;;  %v1710_v59 = vmul.f32 1.442695, %v1707_v57 }
 0x57c   : > { %v1224_v12 = vmul.f32 1.442695, %v1222_v10  ;;  %v1708_v60 = vmul.f32 1.442695, %v1706_v58 }
 0x57d   : > { %3411 = vpow2.f32 %v1226_v11 }
 0x57e   : > { %3413 = vpow2.f32 %v1224_v12 }
 0x587   : > { %v3412_v13 = vpop.eup %3411 }
 0x588   : > { %v3414_v14 = vpop.eup %3413  ;;  %v1235_v15 = vsel %vm739_vm2, %v3412_v13, 0.0 }
 0x589   : > { %v1236_v16 = vrot.slane %v1235_v15, 4  ;;  %v1228_v17 = vsel %vm739_vm2, %v3414_v14, 0.0 }
 0x58a   : > { %v1229_v18 = vrot.slane %v1228_v17, 4 }
 0x58b   : > { %v1237_v20 = vadd.f32 %v1236_v16, %v1235_v15 }
 0x58c   : > { %v1230_v22 = vadd.f32 %v1229_v18, %v1228_v17 }
 0x58d   : > { %v1238_v23 = vrot.slane %v1237_v20, 2 }
 0x58e   : > { %v1231_v24 = vrot.slane %v1230_v22, 2 }
 0x58f   : > { %v1239_v28 = vadd.f32 %v1238_v23, %v1237_v20  ;;  %v2916_v20 = vld [vmem:[%s3945_s4 + $0x28] sm:$0xff] }
 0x590   : > { %v1232_v32 = vadd.f32 %v1231_v24, %v1230_v22  ;;  %v3302_v21 = vpack.c.bf16 %v2916_v20, %v2915_v19 }
 0x591   : > { %v1240_v34 = vrot.slane %v1239_v28, 1 }
 0x592   : > { %v1233_v35 = vrot.slane %v1232_v32, 1 }
 0x593   : > { %v1241_v37 = vadd.f32 %v1240_v34, %v1239_v28 }
 0x594   : > { %v1234_v39 = vadd.f32 %v1233_v35, %v1232_v32 }
 0x595   : > { %3415 = vrcp.f32 %v1241_v37  ;;  %v2933_v37 = vld [vmem:[%s3945_s4 + $0x40] sm:$0xff] }
 0x596   : > { %3417 = vrcp.f32 %v1234_v39  ;;  %v3318_v41 = vpack.c.bf16 %v2934_v38, %v2933_v37  ;;  %v2951_v38 = vld [vmem:[%s3945_s4 + $0x60] sm:$0xff] }
 0x597   : > { %3419 = vpow2.f32 %v1710_v59 }
 0x598   : > { %3421 = vpow2.f32 %v1708_v60 }
 0x59f   : > { %v3416_v45 = vpop.eup %3415 }
 0x5a0   : > { %v3418_v47 = vpop.eup %3417  ;;  %v1245_v48 = vmul.f32 %v3416_v45, %v3412_v13  ;;  %v2936_v45 = vld [vmem:[%s3945_s4 + $0x58] sm:$0xff] }
 0x5a1   : > { %v1243_v49 = vmul.f32 %v3418_v47, %v3414_v14  ;;  %v3420_v61 = vpop.eup %3419  ;;  %v3322_v46 = vpack.c.bf16 %v2936_v45, %v2935_v44  ;;  %v2941_v47 = vld [vmem:[%s3941_s0 + $0x60] sm:$0xff] }
 0x5a2   : > { %1278 = vxpose.xlu1.b32.start.end [1/1] (short) (narrow) %v1245_v48, 16  ;;  %v3422_v62 = vpop.eup %3421  ;;  %v1719_v63 = vsel %vm739_vm2, %v3420_v61, 0.0  ;;  %v2942_v48 = vld [vmem:[%s3941_s0 + $0x68] sm:$0xff] }
 0x5a3   : > { %1246 = vxpose.xlu0.b32.start.end [1/1] (short) (narrow) %v1243_v49, 16  ;;  %v1712_v0 = vsel %vm739_vm2, %v3422_v62, 0.0  ;;  %v1720_v1 = vrot.slane %v1719_v63, 4  ;;  %v3326_v49 = vpack.c.bf16 %v2942_v48, %v2941_v47 }
 0x5a4   : > { %v1713_v2 = vrot.slane %v1712_v0, 4 }
 0x5a5   : > { %v1721_v3 = vadd.f32 %v1720_v1, %v1719_v63 }
 0x5a6   : > { %v1714_v4 = vadd.f32 %v1713_v2, %v1712_v0 }
 0x5a7   : > { %v1722_v5 = vrot.slane %v1721_v3, 2 }
 0x5a8   : > { %v1715_v6 = vrot.slane %v1714_v4, 2 }
 0x5a9   : > { %v1723_v7 = vadd.f32 %v1722_v5, %v1721_v3 }
 0x5aa   : > { %v1716_v8 = vadd.f32 %v1715_v6, %v1714_v4 }
 0x5ab   : > { %v1724_v9 = vrot.slane %v1723_v7, 1 }
 0x5ac   : > { %v1717_v10 = vrot.slane %v1716_v8, 1 }
 0x5ad   : > { %v1725_v11 = vadd.f32 %v1724_v9, %v1723_v7 }
 0x5ae   : > { %v1718_v12 = vadd.f32 %v1717_v10, %v1716_v8 }
 0x5af   : > { %3423 = vrcp.f32 %v1725_v11 }
 0x5b0   : > { %3425 = vrcp.f32 %v1718_v12 }
 0x5b9   : > { %v3424_v13 = vpop.eup %3423 }
 0x5ba   : > { %v3426_v14 = vpop.eup %3425  ;;  %v1729_v15 = vmul.f32 %v3424_v13, %v3420_v61 }
 0x5bb   : > { %v1727_v16 = vmul.f32 %v3426_v14, %v3422_v62 }
 0x5c4   : > { %1880 = vrot.lane.b32.xlu1 %v3689_v31, %s3462_s23 }
 0x5d0   : > { %1795 = vrot.lane.b32.xlu0 %v3682_v27, %s3462_s23 }
 0x5ed   : > { %1762 = vxpose.xlu1.b32.start.end [1/1] (short) (narrow) %v1729_v15, 16 }
 0x5ee   : > { %1730 = vxpose.xlu0.b32.start.end [1/1] (short) (narrow) %v1727_v16, 16 }
 0x60f   : > { %2091 = vrot.lane.b32.xlu1 %v3687_v29, %s3463_s27 }
 0x613   : > { %2364 = vrot.lane.b32.xlu1 %v3689_v31, %s3463_s27 }
 0x61b   : > { %2089 = vrot.lane.b32.xlu0 %v3680_v25, %s3463_s27  ;;  %v2917_v25 = vld [vmem:[%s3945_s4 + $0x30] sm:$0xff] }
 0x61f   : > { %2279 = vrot.lane.b32.xlu0 %v3682_v27, %s3463_s27  ;;  %v2918_v27 = vld [vmem:[%s3945_s4 + $0x38] sm:$0xff] }
 0x620   : > { %v3306_v22 = vpack.c.bf16 %v2918_v27, %v2917_v25 }
 0x622   : > { %v1294_v18 = vpop.trf.xlu1 }
 0x623   : > { %v1262_v17 = vpop.trf.xlu0 }
 0x624   : > { %3116 = vmatprep.mubr.msk.f32.mxu1 %vm842_vm3, %v1262_v17 }
 0x626   : > { %v1295_v31 = vpop.trf.xlu1 }
 0x627   : > { %v1263_v29 = vpop.trf.xlu0 }
 0x628   : > { %3117 = vmatmul.mubr.msk.f32.vlgmr.msra.gmra.mrb[12].mxu1 %vm842_vm3, %v1263_v29 }
 0x629   : > { %3120 = vmatpush3.msra.mxu1 %v3760_v50  ;;  %3121 = vmatprep.mubr.msk.f32.mxu1 %vm842_vm3, %v1294_v18 }
 0x62a   : > { %3303 = vmatprep.subr.bf16.mxu1 %v3302_v21 }
 0x62c   : > { %3122 = vmatmul.mubr.msk.f32.vlgmr.msra.gmra.mrb[14].mxu1 %vm842_vm3, %v1295_v31 }
 0x62d   : > { %3305 = vmatpush3.bf16.msra.mxu1 %v3302_v21 }
 0x62e   : > { %3307 = vmatprep.subr.bf16.mxu1 %v3306_v22 }
 0x631   : > { %3309 = vmatpush3.bf16.msra.mxu1 %v3306_v22 }
 0x636   : > { %v1881_v23 = vpop.permute.xlu1 %1880 }
 0x637   : > { %3154 = vmatprep.subr.mxu1 %v1881_v23 }
 0x642   : > { %v1796_v24 = vpop.permute.xlu0 %1795 }
 0x643   : > { %3149 = vmatprep.subr.mxu0 %v1796_v24 }
 0x644   : > { %3150 = vmatpush3.msra.mxu0 %v1796_v24 }
 0x66d   : > { %v1778_v50 = vpop.trf.xlu1 }
 0x66e   : > { %v1746_v26 = vpop.trf.xlu0 }
 0x66f   : > { %3151 = vmatprep.mubr.msk.f32.mxu0 %vm842_vm3, %v1746_v26 }
 0x671   : > { %v1779_v30 = vpop.trf.xlu1 }
 0x672   : > { %v1747_v28 = vpop.trf.xlu0 }
 0x673   : > { %3152 = vmatmul.mubr.msk.f32.vlgmr.msra.gmra.mrb[6].mxu0 %vm842_vm3, %v1747_v28 }
 0x681   : > { %v2092_v32 = vpop.permute.xlu1 %2091 }
 0x685   : > { %v3802_v36 = vpop.permute.xlu1 %2364 }
 0x68d   : > { %v2090_v34 = vpop.permute.xlu0 %2089 }
 0x691   : > { %v2280_v35 = vpop.permute.xlu0 %2279 }
 0x692   : > { %3184 = vmatprep.subr.mxu0 %v2280_v35 }
 0x693   : > { %3185 = vmatpush3.msra.mxu0 %v2280_v35 }
 0x694   : > { %3189 = vmatprep.subr.mxu0 %v3802_v36 }
 0x6fb   : > { %v3118_v39 = vpop.f32.mrb[12].mxu1 }
 0x6fc   : > { %v1386_v40 = vpop.f32.mrb[13].mxu1 }
 0x6fd   : > { %3132 = vmatprep.mubr.msk.f32.mxu1 %vm653_vm0, %v1386_v40  ;;  %v2953_v40 = vld [vmem:[%s3945_s4 + $0x70] sm:$0xff] }
 0x6fe   : > { %3133 = vmatmul.mubr.msk.f32.vlgmr.msra.gmra.mrb[6].mxu1 %vm653_vm0, %v3118_v39  ;;  %v2952_v39 = vld [vmem:[%s3945_s4 + $0x68] sm:$0xff] }
 0x6ff   : > { %3155 = vmatpush3.msra.mxu1 %v1881_v23  ;;  %v3123_v42 = vpop.f32.mrb[14].mxu1 }
 0x700   : > { %v1471_v43 = vpop.f32.mrb[15].mxu1  ;;  %3319 = vmatprep.subr.bf16.mxu1 %v3318_v41 }
 0x701   : > { %3135 = vmatprep.mubr.msk.f32.mxu1 %vm653_vm0, %v1471_v43 }
 0x702   : > { %3136 = vmatmul.mubr.msk.f32.gmra.mrb[8].mxu1 %vm653_vm0, %v3123_v42  ;;  %v2954_v42 = vld [vmem:[%s3945_s4 + $0x78] sm:$0xff] }
 0x703   : > { %3156 = vmatprep.mubr.msk.f32.mxu1 %vm842_vm3, %v1778_v50  ;;  %v3338_v43 = vpack.c.bf16 %v2954_v42, %v2953_v40 }
 0x706   : > { %3157 = vmatmul.mubr.msk.f32.vlgmr.msra.gmra.mrb[16].mxu1 %vm842_vm3, %v1779_v30 }
 0x707   : > { %3321 = vmatpush3.bf16.msra.mxu1 %v3318_v41  ;;  %v3334_v41 = vpack.c.bf16 %v2952_v39, %v2951_v38 }
 0x708   : > { %3323 = vmatprep.subr.bf16.mxu1 %v3322_v46 }
 0x70b   : > { %3325 = vmatpush3.bf16.msra.mxu1 %v3322_v46 }
 0x70c   : > { %3327 = vmatprep.subr.bf16.mxu1 %v3326_v49 }
 0x746   : > { %v3153_v51 = vpop.f32.mrb[6].mxu0 }
 0x747   : > { %v1870_v52 = vpop.f32.mrb[7].mxu0 }
 0x748   : > { %3167 = vmatprep.mubr.msk.f32.mxu1 %vm653_vm0, %v1870_v52 }
 0x749   : > { %3168 = vmatmul.mubr.msk.f32.vlgmr.msra.gmra.mrb[6].mxu1 %vm653_vm0, %v3153_v51 }
 0x74a   : > { %3329 = vmatpush3.bf16.msra.mxu1 %v3326_v49 }
 0x74b   : > { %3331 = vmatprep.subr.bf16.mxu1 %v3330_v55 }
 0x74e   : > { %3333 = vmatpush3.bf16.msra.mxu1 %v3330_v55 }
 0x74f   : > { %3335 = vmatprep.subr.bf16.mxu1 %v3334_v41 }
 0x7d9   : > { %v3158_v56 = vpop.f32.mrb[16].mxu1 }
 0x7da   : > { %v1955_v57 = vpop.f32.mrb[17].mxu1 }
 0x7db   : > { %3170 = vmatprep.mubr.msk.f32.mxu1 %vm653_vm0, %v1955_v57 }
 0x7dc   : > { %3171 = vmatmul.mubr.msk.f32.gmra.mrb[8].mxu1 %vm653_vm0, %v3158_v56 }
 0x7dd   : > { %3181 = vmatprep.mubr.msk.f32.mxu1 %vm653_vm0, %v2090_v34 }
 0x7e0   : > { %3182 = vmatmul.mubr.msk.f32.vlgmr.msra.gmra.mrb[18].mxu1 %vm653_vm0, %v2092_v32 }
 0x7e1   : > { %3337 = vmatpush3.bf16.msra.mxu1 %v3334_v41 }
 0x7e2   : > { %3339 = vmatprep.subr.bf16.mxu1 %v3338_v43 }
 0x7e5   : > { %3341 = vmatpush3.bf16.msra.mxu1 %v3338_v43 }
 0x8b3   : > { %v3183_v58 = vpop.f32.mrb[18].mxu1 }
 0x8b4   : > { %v2173_v59 = vmul.f32 0.17677669, %v3183_v58  ;;  %v2163_v60 = vpop.f32.mrb[19].mxu1 }
 0x8b5   : > { %v2172_v61 = vmul.f32 0.17677669, %v2163_v60 }
 0x8b6   : > { %v2175_v62 = vadd.f32 %v2173_v59, %v3695_v33 }
 0x8b7   : > { %v2174_v63 = vadd.f32 %v2172_v61, %v3695_v33  ;;  %v2643_v61 = vld [vmem:[%s3947_s6] sm:$0xff] }
 0x8b8   : > { %v2183_v0 = vsel %vm739_vm2, %v2175_v62, -inf }
 0x8b9   : > { %v2184_v1 = vrot.slane %v2183_v0, 4  ;;  %v2176_v2 = vsel %vm739_vm2, %v2174_v63, -inf }
 0x8ba   : > { %v2177_v3 = vrot.slane %v2176_v2, 4 }
 0x8bb   : > { %v2185_v4 = vmax.f32 %v2183_v0, %v2184_v1  ;;  %v2646_v1 = vld [vmem:[%s3947_s6 + $0x18] sm:$0xff] }
 0x8bc   : > { %v2178_v5 = vmax.f32 %v2176_v2, %v2177_v3  ;;  %v2647_v3 = vld [vmem:[%s3947_s6 + $0x20] sm:$0xff] }
 0x8bd   : > { %v2186_v6 = vrot.slane %v2185_v4, 2 }
 0x8be   : > { %v2179_v7 = vrot.slane %v2178_v5, 2 }
 0x8bf   : > { %v2187_v8 = vmax.f32 %v2185_v4, %v2186_v6  ;;  %v2648_v4 = vld [vmem:[%s3947_s6 + $0x28] sm:$0xff] }
 0x8c0   : > { %v2180_v9 = vmax.f32 %v2178_v5, %v2179_v7  ;;  %v3350_v5 = vpack.c.bf16 %v2648_v4, %v2647_v3  ;;  %v2962_v3 = vld [vmem:[%s3948_s7] ss:$0 sm:$0xff] }
 0x8c1   : > { %v2188_v10 = vrot.slane %v2187_v8, 1 }
 0x8c2   : > { %v2181_v11 = vrot.slane %v2180_v9, 1 }
 0x8c3   : > { %v2189_v12 = vmax.f32 %v2187_v8, %v2188_v10 }
 0x8c4   : > { %v2182_v13 = vmax.f32 %v2180_v9, %v2181_v11 }
 0x8c5   : > { %v2191_v14 = vsub.f32 %v2175_v62, %v2189_v12  ;;  %v2644_v62 = vld [vmem:[%s3947_s6 + $0x8] sm:$0xff] }
 0x8c6   : > { %v2190_v15 = vsub.f32 %v2174_v63, %v2182_v13  ;;  %v2645_v63 = vld [vmem:[%s3947_s6 + $0x10] sm:$0xff]  ;;  %v3342_v0 = vpack.c.bf16 %v2644_v62, %v2643_v61 }
 0x8c7   : > { %v2194_v16 = vmul.f32 1.442695, %v2191_v14  ;;  %v3346_v2 = vpack.c.bf16 %v2646_v1, %v2645_v63 }
 0x8c8   : > { %v2192_v33 = vmul.f32 1.442695, %v2190_v15 }
 0x8c9   : > { %3427 = vpow2.f32 %v2194_v16 }
 0x8ca   : > { %3429 = vpow2.f32 %v2192_v33 }
 0x8d3   : > { %v3428_v17 = vpop.eup %3427 }
 0x8d4   : > { %v3430_v18 = vpop.eup %3429  ;;  %v2203_v19 = vsel %vm739_vm2, %v3428_v17, 0.0 }
 0x8d5   : > { %v2204_v20 = vrot.slane %v2203_v19, 4  ;;  %v2196_v21 = vsel %vm739_vm2, %v3430_v18, 0.0 }
 0x8d6   : > { %v2197_v29 = vrot.slane %v2196_v21, 4 }
 0x8d7   : > { %v2205_v25 = vadd.f32 %v2204_v20, %v2203_v19 }
 0x8d8   : > { %v2198_v27 = vadd.f32 %v2197_v29, %v2196_v21  ;;  %v2649_v21 = vld [vmem:[%s3947_s6 + $0x30] sm:$0xff]  ;;  %v2650_v29 = vld [vmem:[%s3947_s6 + $0x38] sm:$0xff] }
 0x8d9   : > { %v2206_v31 = vrot.slane %v2205_v25, 2 }
 0x8da   : > { %v2199_v22 = vrot.slane %v2198_v27, 2 }
 0x8db   : > { %v2207_v23 = vadd.f32 %v2206_v31, %v2205_v25  ;;  %v3354_v25 = vpack.c.bf16 %v2650_v29, %v2649_v21  ;;  %v2652_v31 = vld [vmem:[%s3947_s6 + $0x48] sm:$0xff] }
 0x8dc   : > { %v2200_v24 = vadd.f32 %v2199_v22, %v2198_v27  ;;  %v2651_v27 = vld [vmem:[%s3947_s6 + $0x40] sm:$0xff] }
 0x8dd   : > { %v2208_v26 = vrot.slane %v2207_v23, 1  ;;  %v3358_v22 = vpack.c.bf16 %v2652_v31, %v2651_v27 }
 0x8de   : > { %v2201_v28 = vrot.slane %v2200_v24, 1 }
 0x8df   : > { %v2209_v50 = vadd.f32 %v2208_v26, %v2207_v23  ;;  %v2653_v23 = vld [vmem:[%s3947_s6 + $0x50] sm:$0xff] }
 0x8e0   : > { %v2202_v30 = vadd.f32 %v2201_v28, %v2200_v24  ;;  %v2654_v24 = vld [vmem:[%s3947_s6 + $0x58] sm:$0xff]  ;;  %v2655_v28 = vld [vmem:[%s3947_s6 + $0x60] sm:$0xff] }
 0x8e1   : > { %3431 = vrcp.f32 %v2209_v50  ;;  %v3362_v26 = vpack.c.bf16 %v2654_v24, %v2653_v23  ;;  %v2656_v50 = vld [vmem:[%s3947_s6 + $0x68] sm:$0xff] }
 0x8e2   : > { %3433 = vrcp.f32 %v2202_v30  ;;  %v2657_v30 = vld [vmem:[%s3947_s6 + $0x70] sm:$0xff] }
 0x8eb   : > { %v3432_v32 = vpop.eup %3431 }
 0x8ec   : > { %v3434_v34 = vpop.eup %3433  ;;  %v2213_v35 = vmul.f32 %v3432_v32, %v3428_v17  ;;  %v3366_v32 = vpack.c.bf16 %v2656_v50, %v2655_v28 }
 0x8ed   : > { %v2211_v37 = vmul.f32 %v3434_v34, %v3430_v18  ;;  %v2658_v34 = vld [vmem:[%s3947_s6 + $0x78] sm:$0xff] }
 0x8ee   : > { %2246 = vxpose.xlu1.b32.start.end [1/1] (short) (narrow) %v2213_v35, 16  ;;  %v3370_v35 = vpack.c.bf16 %v2658_v34, %v2657_v30 }
 0x8ef   : > { %2214 = vxpose.xlu0.b32.start.end [1/1] (short) (narrow) %v2211_v37, 16 }
 0x96e   : > { %v2262_v45 = vpop.trf.xlu1 }
 0x96f   : > { %v2230_v44 = vpop.trf.xlu0 }
 0x970   : > { %3186 = vmatprep.mubr.msk.f32.mxu0 %vm842_vm3, %v2230_v44 }
 0x972   : > { %v2263_v47 = vpop.trf.xlu1 }
 0x973   : > { %v2231_v46 = vpop.trf.xlu0 }
 0x974   : > { %3187 = vmatmul.mubr.msk.f32.vlgmr.msra.gmra.mrb[8].mxu0 %vm842_vm3, %v2231_v46 }
 0x975   : > { %3190 = vmatpush3.msra.mxu0 %v3802_v36  ;;  %3191 = vmatprep.mubr.msk.f32.mxu0 %vm842_vm3, %v2262_v45  ;;  %v2959_v36 = vld [vmem:[%s3946_s5] ss:$0 sm:$0xff] }
 0x976   : > { %3343 = vmatprep.subr.bf16.mxu0 %v3342_v0 }
 0x978   : > { %3192 = vmatmul.mubr.msk.f32.vlgmr.msra.gmra.mrb[10].mxu0 %vm842_vm3, %v2263_v47 }
 0x979   : > { %3345 = vmatpush3.bf16.msra.mxu0 %v3342_v0 }
 0x97a   : > { %3347 = vmatprep.subr.bf16.mxu0 %v3346_v2 }
 0x97d   : > { %3349 = vmatpush3.bf16.msra.mxu0 %v3346_v2 }
 0x97e   : > { %3351 = vmatprep.subr.bf16.mxu0 %v3350_v5 }
 0x981   : > { %3353 = vmatpush3.bf16.msra.mxu0 %v3350_v5 }
 0x982   : > { %3355 = vmatprep.subr.bf16.mxu0 %v3354_v25 }
 0x985   : > { %3357 = vmatpush3.bf16.msra.mxu0 %v3354_v25 }
 0x986   : > { %3359 = vmatprep.subr.bf16.mxu0 %v3358_v22 }
 0x989   : > { %3361 = vmatpush3.bf16.msra.mxu0 %v3358_v22 }
 0x98a   : > { %3363 = vmatprep.subr.bf16.mxu0 %v3362_v26 }
 0x98d   : > { %3365 = vmatpush3.bf16.msra.mxu0 %v3362_v26 }
 0x98e   : > { %3367 = vmatprep.subr.bf16.mxu0 %v3366_v32 }
 0x991   : > { %3369 = vmatpush3.bf16.msra.mxu0 %v3366_v32 }
 0x992   : > { %3371 = vmatprep.subr.bf16.mxu0 %v3370_v35 }
 0x995   : > { %3373 = vmatpush3.bf16.msra.mxu0 %v3370_v35 }
 0xa47   : > { %v3188_v48 = vpop.f32.mrb[8].mxu0 }
 0xa48   : > { %v2354_v49 = vpop.f32.mrb[9].mxu0 }
 0xa49   : > { %3202 = vmatprep.mubr.msk.f32.mxu1 %vm653_vm0, %v2354_v49 }
 0xa4a   : > { %3203 = vmatmul.mubr.msk.f32.vlgmr.msra.gmra.mrb[6].mxu1 %vm653_vm0, %v3188_v48 }
 0xa4b   : > { %v3193_v51 = vpop.f32.mrb[10].mxu0 }
 0xa4c   : > { %v2439_v52 = vpop.f32.mrb[11].mxu0 }
 0xa4d   : > { %3205 = vmatprep.mubr.msk.f32.mxu1 %vm653_vm0, %v2439_v52 }
 0xa4e   : > { %3206 = vmatmul.mubr.msk.f32.gmra.mrb[8].mxu1 %vm653_vm0, %v3193_v51  ;;  %v2960_v51 = vld [vmem:[%s3951_s10] ss:$0 sm:$0xff] }
 0xb1d   : > { %v3204_v53 = vpop.f32.mrb[6].mxu1 }
 0xb1e   : > { %v2574_v54 = vadd.f32 %v3204_v53, %v2959_v36  ;;  %v2531_v55 = vpop.f32.mrb[7].mxu1 }
 0xb1f   : > { %v2573_v56 = vadd.f32 %v2959_v36, %v2531_v55 }
 0xb20   : > { %2581 = vadd.xlane.f32.xlu1 %v2574_v54 }
 0xb21   : > { %2579 = vadd.xlane.f32.xlu0 %v2573_v56  ;;  %v3207_v57 = vpop.f32.mrb[8].mxu1 }
 0xb22   : > { %v2541_v58 = vpop.f32.mrb[9].mxu1  ;;  %v2576_v60 = vadd.f32 %v3207_v57, %v2959_v36 }
 0xb23   : > { %v2575_v59 = vadd.f32 %v2959_v36, %v2541_v58 }
 0xb25   : > { %2583 = vadd.xlane.f32.xlu0 %v2575_v59 }
 0xb29   : > { %2585 = vadd.xlane.f32.xlu0 %v2576_v60 }
 0xbad   : > { %v2582_v6 = vpop.xlane.xlu1 %2581 }
 0xbae   : > { %v2588_v7 = vmul.f32 0.0078125, %v2582_v6  ;;  %v2580_v8 = vpop.xlane.xlu0 %2579 }
 0xbaf   : > { %v2587_v9 = vmul.f32 0.0078125, %v2580_v8 }
 0xbb0   : > { %v2592_v10 = vsub.f32 %v2574_v54, %v2588_v7  ;;  %v2961_v54 = vld [vmem:[%s3952_s11] ss:$0 sm:$0xff] }
 0xbb1   : > { %v2591_v11 = vsub.f32 %v2573_v56, %v2587_v9 }
 0xbb2   : > { %v2584_v12 = vpop.xlane.xlu0 %2583  ;;  %v2596_v13 = vmul.f32 %v2592_v10, %v2592_v10 }
 0xbb3   : > { %v2589_v14 = vmul.f32 0.0078125, %v2584_v12  ;;  %v2595_v15 = vmul.f32 %v2591_v11, %v2591_v11 }
 0xbb4   : > { %2601 = vadd.xlane.f32.xlu1 %v2596_v13 }
 0xbb5   : > { %v2593_v16 = vsub.f32 %v2575_v59, %v2589_v14  ;;  %2599 = vadd.xlane.f32.xlu0 %v2595_v15 }
 0xbb6   : > { %v2586_v33 = vpop.xlane.xlu0 %2585 }
 0xbb7   : > { %v2590_v17 = vmul.f32 0.0078125, %v2586_v33  ;;  %v2597_v18 = vmul.f32 %v2593_v16, %v2593_v16 }
 0xbb9   : > { %v2594_v19 = vsub.f32 %v2576_v60, %v2590_v17  ;;  %2603 = vadd.xlane.f32.xlu0 %v2597_v18 }
 0xbbb   : > { %v2598_v20 = vmul.f32 %v2594_v19, %v2594_v19 }
 0xbbd   : > { %2605 = vadd.xlane.f32.xlu1 %v2598_v20 }
 0xc41   : > { %v2602_v37 = vpop.xlane.xlu1 %2601 }
 0xc42   : > { %v2608_v38 = vmul.f32 0.0078125, %v2602_v37  ;;  %v2600_v39 = vpop.xlane.xlu0 %2599 }
 0xc43   : > { %v2607_v40 = vmul.f32 0.0078125, %v2600_v39 }
 0xc44   : > { %v2612_v41 = vadd.f32 1e-05, %v2608_v38 }
 0xc45   : > { %v2611_v42 = vadd.f32 1e-05, %v2607_v40 }
 0xc46   : > { %3435 = vrsqrt.f32 %v2612_v41  ;;  %v2604_v43 = vpop.xlane.xlu0 %2603 }
 0xc47   : > { %3437 = vrsqrt.f32 %v2611_v42  ;;  %v2609_v44 = vmul.f32 0.0078125, %v2604_v43 }
 0xc49   : > { %v2613_v45 = vadd.f32 1e-05, %v2609_v44 }
 0xc4a   : > { %v2606_v46 = vpop.xlane.xlu1 %2605 }
 0xc4b   : > { %3439 = vrsqrt.f32 %v2613_v45  ;;  %v2610_v47 = vmul.f32 0.0078125, %v2606_v46  ;;  %v2963_v45 = vld [vmem:[%s3953_s12] ss:$0 sm:$0xff] }
 0xc4d   : > { %v2614_v48 = vadd.f32 1e-05, %v2610_v47 }
 0xc4f   : > { %3441 = vrsqrt.f32 %v2614_v48  ;;  %v2964_v48 = vld [vmem:[%s3954_s13] ss:$0 sm:$0xff] }
 0xc50   : > { %v3436_v49 = vpop.eup %3435 }
 0xc51   : > { %v3438_v52 = vpop.eup %3437  ;;  %v2620_v36 = vmul.f32 %v3436_v49, %v2592_v10 }
 0xc52   : > { %v2619_v53 = vmul.f32 %v3438_v52, %v2591_v11 }
 0xc53   : > { %v2630_v55 = vmul.f32 %v2960_v51, %v2620_v36 }
 0xc54   : > { %v2629_v56 = vmul.f32 %v2960_v51, %v2619_v53 }
 0xc55   : > { %v3440_v57 = vpop.eup %3439  ;;  %v2640_v60 = vadd.f32 %v2961_v54, %v2630_v55 }
 0xc56   : > { %v2639_v58 = vadd.f32 %v2961_v54, %v2629_v56  ;;  %v2621_v59 = vmul.f32 %v3440_v57, %v2593_v16 }
 0xc58   : > { %3240 = vmatprep.mubr.f32.mxu0 %v2639_v58  ;;  %v2631_v61 = vmul.f32 %v2960_v51, %v2621_v59 }
 0xc59   : > { %v3442_v62 = vpop.eup %3441  ;;  %3241 = vmatmul.mubr.f32.vlgmr.msra.gmra.mrb[12].mxu0 %v2640_v60 }
 0xc5a   : > { %v2641_v63 = vadd.f32 %v2961_v54, %v2631_v61  ;;  %v2622_v0 = vmul.f32 %v3442_v62, %v2594_v19 }
 0xc5c   : > { %3243 = vmatprep.mubr.f32.mxu0 %v2641_v63  ;;  %v2632_v1 = vmul.f32 %v2960_v51, %v2622_v0 }
 0xc5e   : > { %v2642_v2 = vadd.f32 %v2961_v54, %v2632_v1 }
 0xc60   : > { %3244 = vmatmul.mubr.f32.gmra.mrb[14].mxu0 %v2642_v2 }
 0xd2c   : > { %v3242_v4 = vpop.f32.mrb[12].mxu0 }
 0xd2d   : > { %v2738_v5 = vadd.f32 %v3242_v4, %v2962_v3  ;;  %v2732_v6 = vpop.f32.mrb[13].mxu0 }
 0xd2e   : > { %v2733_v7 = vadd.f32 %v2962_v3, %v2732_v6 }
 0xd2f   : > { %v2752_v8 = vadd.f32 %v2738_v5, %v2640_v60 }
 0xd30   : > { %v2751_v9 = vadd.f32 %v2733_v7, %v2639_v58 }
 0xd31   : > { %2759 = vadd.xlane.f32.xlu1 %v2752_v8 }
 0xd32   : > { %2757 = vadd.xlane.f32.xlu0 %v2751_v9 }
 0xd33   : > { %v3245_v10 = vpop.f32.mrb[14].mxu0 }
 0xd34   : > { %v2748_v11 = vadd.f32 %v3245_v10, %v2962_v3  ;;  %v2742_v12 = vpop.f32.mrb[15].mxu0 }
 0xd35   : > { %v2743_v13 = vadd.f32 %v2962_v3, %v2742_v12 }
 0xd36   : > { %v2754_v14 = vadd.f32 %v2748_v11, %v2642_v2 }
 0xd37   : > { %v2753_v15 = vadd.f32 %v2743_v13, %v2641_v63 }
 0xd38   : > { %2763 = vadd.xlane.f32.xlu1 %v2754_v14 }
 0xd39   : > { %2761 = vadd.xlane.f32.xlu0 %v2753_v15 }
 0xdbe   : > { %v2760_v16 = vpop.xlane.xlu1 %2759 }
 0xdbf   : > { %v2766_v33 = vmul.f32 0.0078125, %v2760_v16  ;;  %v2758_v17 = vpop.xlane.xlu0 %2757 }
 0xdc0   : > { %v2765_v18 = vmul.f32 0.0078125, %v2758_v17 }
 0xdc1   : > { %v2770_v19 = vsub.f32 %v2752_v8, %v2766_v33 }
 0xdc2   : > { %v2769_v20 = vsub.f32 %v2751_v9, %v2765_v18 }
 0xdc3   : > { %v2774_v21 = vmul.f32 %v2770_v19, %v2770_v19 }
 0xdc4   : > { %v2773_v29 = vmul.f32 %v2769_v20, %v2769_v20 }
 0xdc5   : > { %2779 = vadd.xlane.f32.xlu1 %v2774_v21  ;;  %v2764_v25 = vpop.xlane.xlu1 %2763 }
 0xdc6   : > { %v2768_v27 = vmul.f32 0.0078125, %v2764_v25  ;;  %2777 = vadd.xlane.f32.xlu0 %v2773_v29  ;;  %v2762_v31 = vpop.xlane.xlu0 %2761 }
 0xdc7   : > { %v2767_v22 = vmul.f32 0.0078125, %v2762_v31 }
 0xdc8   : > { %v2772_v23 = vsub.f32 %v2754_v14, %v2768_v27 }
 0xdc9   : > { %v2771_v24 = vsub.f32 %v2753_v15, %v2767_v22 }
 0xdca   : > { %v2776_v26 = vmul.f32 %v2772_v23, %v2772_v23 }
 0xdcb   : > { %v2775_v28 = vmul.f32 %v2771_v24, %v2771_v24 }
 0xdcc   : > { %2783 = vadd.xlane.f32.xlu1 %v2776_v26 }
 0xdcd   : > { %2781 = vadd.xlane.f32.xlu0 %v2775_v28 }
 0xe52   : > { %v2780_v50 = vpop.xlane.xlu1 %2779 }
 0xe53   : > { %v2786_v30 = vmul.f32 0.0078125, %v2780_v50  ;;  %v2778_v32 = vpop.xlane.xlu0 %2777 }
 0xe54   : > { %v2785_v34 = vmul.f32 0.0078125, %v2778_v32 }
 0xe55   : > { %v2790_v35 = vadd.f32 1e-05, %v2786_v30 }
 0xe56   : > { %v2789_v37 = vadd.f32 1e-05, %v2785_v34 }
 0xe57   : > { %3443 = vrsqrt.f32 %v2790_v35 }
 0xe58   : > { %3445 = vrsqrt.f32 %v2789_v37 }
 0xe59   : > { %v2784_v38 = vpop.xlane.xlu1 %2783 }
 0xe5a   : > { %v2788_v39 = vmul.f32 0.0078125, %v2784_v38  ;;  %v2782_v40 = vpop.xlane.xlu0 %2781 }
 0xe5b   : > { %v2787_v41 = vmul.f32 0.0078125, %v2782_v40 }
 0xe5c   : > { %v2792_v42 = vadd.f32 1e-05, %v2788_v39 }
 0xe5d   : > { %v2791_v43 = vadd.f32 1e-05, %v2787_v41 }
 0xe5e   : > { %3447 = vrsqrt.f32 %v2792_v42 }
 0xe5f   : > { %3449 = vrsqrt.f32 %v2791_v43 }
 0xe61   : > { %v3444_v44 = vpop.eup %3443 }
 0xe62   : > { %v3446_v46 = vpop.eup %3445  ;;  %v2798_v47 = vmul.f32 %v3444_v44, %v2770_v19 }
 0xe63   : > { %v2797_v49 = vmul.f32 %v3446_v46, %v2769_v20 }
 0xe64   : > { %v2808_v51 = vmul.f32 %v2963_v45, %v2798_v47 }
 0xe65   : > { %v2807_v52 = vmul.f32 %v2963_v45, %v2797_v49 }
 0xe66   : > { %v2818_v36 = vadd.f32 %v2964_v48, %v2808_v51 }
 0xe67   : > { %v2817_v53 = vadd.f32 %v2964_v48, %v2807_v52 }
 0xe68   : > { %v3448_v54 = vpop.eup %3447  ;;  %2822 = vst [vmem:[%s471_s22 + $0x8] sm:$0xff] %v2818_v36 }
 0xe69   : > { %v3450_v55 = vpop.eup %3449  ;;  %2821 = vst [vmem:[%s471_s22] sm:$0xff] %v2817_v53  ;;  %v2800_v56 = vmul.f32 %v3448_v54, %v2772_v23 }
 0xe6a   : > { %v2799_v57 = vmul.f32 %v3450_v55, %v2771_v24 }
 0xe6b   : > { %v2810_v58 = vmul.f32 %v2963_v45, %v2800_v56 }
 0xe6c   : > { %v2809_v59 = vmul.f32 %v2963_v45, %v2799_v57 }
 0xe6d   : > { %v2820_v60 = vadd.f32 %v2964_v48, %v2810_v58 }
 0xe6e   : > { %v2819_v61 = vadd.f32 %v2964_v48, %v2809_v59 }
 0xe6f   : > { %2824 = vst [vmem:[%s471_s22 + $0x18] sm:$0xff] %v2820_v60 }
 0xe70   : > { %2823 = vst [vmem:[%s471_s22 + $0x10] sm:$0xff] %v2819_v61 }
 0xe71 PF: > { %s24_s29 = sadd.s32 1, %s3457_s29  }
 0xe72   : > { %p21_p4 = scmp.ge.s32.totalorder %s24_s29, 4  }
 0xe74   :  { %23 = sbr.rel (!%p21_p4) target bundleno = 1 (0x1), region = 112 }

</bundles_post_ra>
